<compile_context>
chip_gen: v7x
topology: tpu7x:2x2x1
jax: 0.10.0
libtpu: 0.0.40
codegen_flags: <defaults>
</compile_context>

<pallas_src>
import jax
import jax.numpy as jnp
from jax.experimental import pallas as pl
from jax.experimental.pallas import tpu as pltpu


def _make_lstm_mls_kernel(V, N, H, L):
    """Fused (wavefronted) multi-layer LSTM + Linear kernel for a fixed geometry.

    Input refs:
      x_ref    : (V*N, F)        bf16  layer-0 inputs, row = v*N + (t*B + b)
      wih0_ref : (F, 4*L*H)      bf16  layer-0 W_ih^T scattered into gate-grouped columns
      wbig_ref : (L*H, 4*L*H)    f32   fused recurrence RHS (W_hh_l diag, W_ih_{l+1} superdiag)
      bias_ref : (1, 4*L*H)      f32   all layers' (b_ih+b_hh) in their gate-group columns
      wlin_ref : (H, OP)         f32   final Linear weight, lane-padded to OP (>=128)
      blin_ref : (1, OP)         f32
      h0_ref   : (N, L*H)        f32   [h_0 | h_1 | ... ] initial hidden carries
      c0_ref   : (N, L*H)        f32   [c_0 | c_1 | ... ] initial cell carries
    Output ref:
      out_ref  : (V*N, OP)       f32   lane-dense final Linear output
    Scratch:
      xp_scr   : (V*N, 4*L*H)    f32   hoisted layer-0 input projection (+ all biases)
      hseq_scr : (V*N, H)        f32   LAST layer's hidden sequence
    """
    GW = L * H          # fused carry width   [h_0 | h_1 | ... | h_{L-1}]
    G4 = 4 * L * H      # fused gate width    [i_* | f_* | g_* | o_*], each group L*H

    def kernel(x_ref, wih0_ref, wbig_ref, bias_ref, wlin_ref, blin_ref,
               h0_ref, c0_ref, out_ref, xp_scr, hseq_scr):
        # (1) Hoisted layer-0 input projection for ALL V sequence steps at once:
        #     one (V*N, F) x (F, 4LH) bf16 MXU matmul (f32 accumulate), off the serial
        #     critical path.  Every layer's fused bias is pre-added in its gate group.
        xp_scr[...] = (
            jnp.dot(x_ref[...], wih0_ref[...], preferred_element_type=jnp.float32)
            + bias_ref[...])

        wbig = wbig_ref[...]            # loop-invariant RHS -> stays staged in the MXU
        bias = bias_ref[...]
        Hc = h0_ref[...]                # (N, L*H) hidden carries of all layers (registers)
        Cc = c0_ref[...]                # (N, L*H) cell   carries of all layers (registers)
        lane = jax.lax.broadcasted_iota(jnp.int32, (N, GW), 1)

        # (2) Wavefronted recurrence, fully unrolled.  At wavefront step w, layer l runs its
        #     sequence step (w - l) iff l <= w <= l + V - 1.  One fused (N, L*H) x (L*H, 4LH)
        #     MXU matmul per step covers every layer's recurrence AND the inter-layer input
        #     projection, so the handoff between layers never touches VMEM.
        for w in range(V + L - 1):
            pre = xp_scr[pl.ds(w * N, N), :] if w < V else bias
            gates = pre + jnp.dot(Hc, wbig, preferred_element_type=jnp.float32)

            # Full-width EUP passes; gate groups are contiguous, aligned L*H-lane slices.
            sig = jax.nn.sigmoid(gates)
            th = jnp.tanh(gates)
            i_g = sig[:, 0 * GW:1 * GW]
            f_g = sig[:, 1 * GW:2 * GW]
            g_g = th[:, 2 * GW:3 * GW]
            o_g = sig[:, 3 * GW:4 * GW]

            # Fused (all-layer) state update, (N, L*H)-wide element-wise VPU work.
            C_new = f_g * Cc + i_g * g_g
            H_new = o_g * jnp.tanh(C_new)

            if w < L - 1:
                # Leading edge: layers l > w have not consumed any input yet -> keep their
                # initial (h, c); only layers 0..w commit their update.
                active = lane < (w + 1) * H
                Cc = jnp.where(active, C_new, Cc)
                Hc = jnp.where(active, H_new, Hc)
            elif w < V + L - 2:
                Cc, Hc = C_new, H_new
            # Trailing-edge garbage of already-finished layers is never read back by an
            # active layer, and the very last step needs no carry write-back at all.

            # Persist only the LAST layer's hidden state for the fused final Linear.
            if w >= L - 1:
                v = w - (L - 1)
                hseq_scr[pl.ds(v * N, N), :] = H_new[:, (L - 1) * H:]

        # (3) Fused final Linear over all V*N rows: lane-dense (>=128-wide) single store.
        out_ref[...] = (
            jnp.dot(hseq_scr[...], wlin_ref[...], preferred_element_type=jnp.float32)
            + blin_ref[...]).astype(out_ref.dtype)

    return kernel


def init_lstm_mls_params(key, input_size, hidden_size, num_layers, output_size):
    """PyTorch-style U(-1/sqrt(H), 1/sqrt(H)) init, stored in native torch layouts."""
    H = hidden_size
    bound = 1.0 / (H ** 0.5)
    layers = []
    for layer in range(num_layers):
        in_dim = input_size if layer == 0 else H
        key, k1, k2, k3, k4 = jax.random.split(key, 5)
        layers.append(dict(
            w_ih=jax.random.uniform(k1, (4 * H, in_dim), jnp.float32, -bound, bound),
            w_hh=jax.random.uniform(k2, (4 * H, H), jnp.float32, -bound, bound),
            bias=(jax.random.uniform(k3, (4 * H,), jnp.float32, -bound, bound)
                  + jax.random.uniform(k4, (4 * H,), jnp.float32, -bound, bound)),
        ))
    key, k5, k6 = jax.random.split(key, 3)
    w_lin = jax.random.uniform(k5, (output_size, H), jnp.float32, -bound, bound)
    b_lin = jax.random.uniform(k6, (output_size,), jnp.float32, -bound, bound)
    return dict(layers=layers, w_lin=w_lin, b_lin=b_lin)


def _pack_kernel_operands(params, F, H, L, O, OP):
    """Build the fused / gate-grouped / lane-padded weight operands (cheap, trace-time)."""
    layers = params["layers"]
    LH = L * H
    G4 = 4 * LH

    def cols(k, l):  # columns of gate k (0:i 1:f 2:g 3:o) for layer l
        return slice(k * LH + l * H, k * LH + (l + 1) * H)

    wih0 = jnp.zeros((F, G4), jnp.float32)
    wbig = jnp.zeros((LH, G4), jnp.float32)
    bias = jnp.zeros((1, G4), jnp.float32)
    for l, lp in enumerate(layers):
        for k in range(4):
            wk_hh = lp["w_hh"][k * H:(k + 1) * H, :].T     # (H, H)
            wk_ih = lp["w_ih"][k * H:(k + 1) * H, :].T     # (in_dim, H)
            wbig = wbig.at[l * H:(l + 1) * H, cols(k, l)].set(wk_hh)
            bias = bias.at[0, cols(k, l)].set(lp["bias"][k * H:(k + 1) * H])
            if l == 0:
                wih0 = wih0.at[:, cols(k, 0)].set(wk_ih)               # hoisted layer-0 input
            else:
                wbig = wbig.at[(l - 1) * H:l * H, cols(k, l)].set(wk_ih)  # inter-layer W_ih

    wlin = jnp.zeros((H, OP), jnp.float32).at[:, :O].set(params["w_lin"].T)
    blin = jnp.zeros((1, OP), jnp.float32).at[0, :O].set(params["b_lin"])
    return wih0.astype(jnp.bfloat16), wbig, bias, wlin, blin


@jax.jit
def lstm_for_mls_forward(input_seq, params, h0, c0):
    """input_seq: (B, V, F, T);  h0, c0: (T, L, B, H)  ->  (T, B, V, O)."""
    B, V, F, T = input_seq.shape
    L = len(params["layers"])
    H = params["layers"][0]["w_hh"].shape[1]
    O = params["w_lin"].shape[0]
    N = T * B                        # all timesteps are independent -> fold into the batch
    OP = 128 * pl.cdiv(O, 128)       # lane-dense output width (unmasked vst)

    wih0, wbig, bias, wlin, blin = _pack_kernel_operands(params, F, H, L, O, OP)

    # (B, V, F, T) -> (V, T, B, F) -> (V*N, F); row = v*N + t*B + b.  bf16 MXU operand.
    x = jnp.transpose(input_seq, (1, 3, 0, 2)).reshape(V * N, F).astype(jnp.bfloat16)
    # (T, L, B, H) -> (T, B, L, H) -> (N, L*H); row = t*B + b, lanes = [h_0 | h_1 | ...].
    h0r = jnp.transpose(h0, (0, 2, 1, 3)).reshape(N, L * H).astype(jnp.float32)
    c0r = jnp.transpose(c0, (0, 2, 1, 3)).reshape(N, L * H).astype(jnp.float32)

    vmem = pl.BlockSpec(memory_space=pltpu.MemorySpace.VMEM)
    out = pl.pallas_call(
        _make_lstm_mls_kernel(V, N, H, L),
        out_shape=jax.ShapeDtypeStruct((V * N, OP), jnp.float32),
        in_specs=[vmem] * 8,
        out_specs=vmem,
        scratch_shapes=[
            # NOTE(scaling): xp_scr grows as T*B*V*4LH*4 B; chunk the hoisted projection
            # over V (or emit_pipeline from HBM) before it approaches the 64 MiB VMEM of v7x.
            pltpu.VMEM((V * N, 4 * L * H), jnp.float32),   # hoisted gate pre-activations
            pltpu.VMEM((V * N, H), jnp.float32),           # last layer's hidden sequence
        ],
    )(x, wih0, wbig, bias, wlin, blin, h0r, c0r)

    # (V*N, OP) -> drop lane padding -> (V, T, B, O) -> (T, B, V, O)  (== torch.stack(target, 0))
    return out[:, :O].reshape(V, T, B, O).transpose(1, 2, 0, 3)


@jax.jit
def _reference_forward(input_seq, params, h0, c0):
    """Pure-JAX (f32, HIGHEST precision) transcription of the PyTorch forward, independent
    of the kernel's wavefront/fusion/reordering tricks, used as the correctness oracle."""
    B, V, F, T = input_seq.shape
    layers = params["layers"]
    H = layers[0]["w_hh"].shape[1]
    hp = jax.lax.Precision.HIGHEST
    outs = []
    for t in range(T):
        layer_in = input_seq[:, :, :, t].astype(jnp.float32)          # (B, V, F)
        for l, lp in enumerate(layers):
            h = h0[t, l]
            c = c0[t, l]
            hs = []
            for v in range(V):
                gates = (jnp.dot(layer_in[:, v, :], lp["w_ih"].T, precision=hp)
                         + jnp.dot(h, lp["w_hh"].T, precision=hp)
                         + lp["bias"])
                i_g = jax.nn.sigmoid(gates[:, 0 * H:1 * H])
                f_g = jax.nn.sigmoid(gates[:, 1 * H:2 * H])
                g_g = jnp.tanh(gates[:, 2 * H:3 * H])
                o_g = jax.nn.sigmoid(gates[:, 3 * H:4 * H])
                c = f_g * c + i_g * g_g
                h = o_g * jnp.tanh(c)
                hs.append(h)
            layer_in = jnp.stack(hs, axis=1)                           # (B, V, H)
        pred = (jnp.dot(layer_in.reshape(B * V, H), params["w_lin"].T, precision=hp)
                + params["b_lin"])
        outs.append(pred.reshape(B, V, -1))
    return jnp.stack(outs, 0)                                          # (T, B, V, O)


if __name__ == "__main__":
    input_size = 16    # F  (num_of_features)
    hidden_size = 32   # H
    num_layers = 2
    output_size = 32   # O
    batch_size = 2     # B  (must equal the input batch dim, as in the reference)
    V = 8              # num_of_vertices (the LSTM sequence length)
    T = 8              # num_of_timesteps

    key = jax.random.PRNGKey(0)
    k_in, k_param, k_h, k_c = jax.random.split(key, 4)

    input_seq = jax.random.normal(k_in, (batch_size, V, input_size, T), jnp.float32)
    params = init_lstm_mls_params(k_param, input_size, hidden_size, num_layers,
                                  output_size)
    # Deterministic stand-in for the per-timestep torch.randn(L, B, H) initial states.
    h0 = jax.random.normal(k_h, (T, num_layers, batch_size, hidden_size), jnp.float32)
    c0 = jax.random.normal(k_c, (T, num_layers, batch_size, hidden_size), jnp.float32)

    out = lstm_for_mls_forward(input_seq, params, h0, c0)
    out = jax.block_until_ready(out)

    assert out.shape == (T, batch_size, V, output_size), out.shape
    assert out.dtype == jnp.float32

    ref = jax.block_until_ready(_reference_forward(input_seq, params, h0, c0))
    # Tolerance accounts for bf16 MXU operands on the hoisted input projection and default
    # MXU precision in-kernel vs the f32 Precision.HIGHEST reference.
    max_err = float(jnp.max(jnp.abs(out - ref)))
    assert max_err < 1e-1, f"max abs error vs reference: {max_err}"

    print("KERNEL_OK")
</pallas_src>

<mosaic_0001>
module attributes {stable_mosaic.version = 11 : i64} {
  func.func @kernel(%arg0: memref<128x16xbf16, #tpu.memory_space<vmem>>, %arg1: memref<16x256xbf16, #tpu.memory_space<vmem>>, %arg2: memref<64x256xf32, #tpu.memory_space<vmem>>, %arg3: memref<1x256xf32, #tpu.memory_space<vmem>>, %arg4: memref<32x128xf32, #tpu.memory_space<vmem>>, %arg5: memref<1x128xf32, #tpu.memory_space<vmem>>, %arg6: memref<16x64xf32, #tpu.memory_space<vmem>>, %arg7: memref<16x64xf32, #tpu.memory_space<vmem>>, %arg8: memref<128x128xf32, #tpu.memory_space<vmem>>, %arg9: memref<128x256xf32, #tpu.memory_space<vmem>>, %arg10: memref<128x32xf32, #tpu.memory_space<vmem>>) attributes {dimension_semantics = [], scalar_prefetch = 0 : i64, scratch_operands = 2 : i64, tpu.core_type = #tpu.core_type<tc>} {
    %c0 = arith.constant 0 : index
    %c0_0 = arith.constant 0 : index
    %0 = vector.load %arg0[%c0, %c0_0] : memref<128x16xbf16, #tpu.memory_space<vmem>>, vector<128x16xbf16>
    %c0_1 = arith.constant 0 : index
    %c0_2 = arith.constant 0 : index
    %1 = vector.load %arg1[%c0_1, %c0_2] : memref<16x256xbf16, #tpu.memory_space<vmem>>, vector<16x256xbf16>
    %cst = arith.constant dense<0.000000e+00> : vector<128x256xf32>
    %2 = tpu.matmul %0, %1, %cst {dimension_numbers = #tpu.dot_dimension_numbers<[1], [0], [0], [1], [0, 0, 1, 1], [], []>} : vector<128x16xbf16>, vector<16x256xbf16>, vector<128x256xf32> -> vector<128x256xf32>
    %c0_3 = arith.constant 0 : index
    %c0_4 = arith.constant 0 : index
    %3 = vector.load %arg3[%c0_3, %c0_4] : memref<1x256xf32, #tpu.memory_space<vmem>>, vector<1x256xf32>
    %4 = vector.broadcast %3 : vector<1x256xf32> to vector<128x256xf32>
    %5 = arith.addf %2, %4 : vector<128x256xf32>
    %c0_5 = arith.constant 0 : index
    %c0_6 = arith.constant 0 : index
    %6 = vector.load %arg9[%c0_5, %c0_6] : memref<128x256xf32, #tpu.memory_space<vmem>>, vector<128x256xf32>
    tpu.vector_store %arg9[%c0_5, %c0_6], %5 {strides = array<i32>} : memref<128x256xf32, #tpu.memory_space<vmem>>, vector<128x256xf32>,
    %c0_7 = arith.constant 0 : index
    %c0_8 = arith.constant 0 : index
    %7 = vector.load %arg2[%c0_7, %c0_8] : memref<64x256xf32, #tpu.memory_space<vmem>>, vector<64x256xf32>
    %c0_9 = arith.constant 0 : index
    %c0_10 = arith.constant 0 : index
    %8 = vector.load %arg3[%c0_9, %c0_10] : memref<1x256xf32, #tpu.memory_space<vmem>>, vector<1x256xf32>
    %c0_11 = arith.constant 0 : index
    %c0_12 = arith.constant 0 : index
    %9 = vector.load %arg6[%c0_11, %c0_12] : memref<16x64xf32, #tpu.memory_space<vmem>>, vector<16x64xf32>
    %c0_13 = arith.constant 0 : index
    %c0_14 = arith.constant 0 : index
    %10 = vector.load %arg7[%c0_13, %c0_14] : memref<16x64xf32, #tpu.memory_space<vmem>>, vector<16x64xf32>
    %11 = tpu.iota {dimensions = array<i32: 1>} : vector<16x64xi32>
    %c0_15 = arith.constant 0 : index
    %c0_16 = arith.constant 0 : index
    %12 = vector.load %arg9[%c0_15, %c0_16] : memref<128x256xf32, #tpu.memory_space<vmem>>, vector<16x256xf32>
    %cst_17 = arith.constant dense<0.000000e+00> : vector<16x256xf32>
    %13 = tpu.matmul %9, %7, %cst_17 {dimension_numbers = #tpu.dot_dimension_numbers<[1], [0], [0], [1], [0, 0, 1, 1], [], []>} : vector<16x64xf32>, vector<64x256xf32>, vector<16x256xf32> -> vector<16x256xf32>
    %14 = arith.addf %12, %13 : vector<16x256xf32>
    %15 = arith.negf %14 : vector<16x256xf32>
    %16 = math.exp %15 : vector<16x256xf32>
    %cst_18 = arith.constant 1.000000e+00 : f32
    %17 = vector.broadcast %cst_18 : f32 to vector<16x256xf32>
    %18 = arith.addf %17, %16 : vector<16x256xf32>
    %19 = arith.divf %17, %18 : vector<16x256xf32>
    %20 = math.tanh %14 : vector<16x256xf32>
    %21 = vector.extract_strided_slice %19 {offsets = [0, 0], sizes = [16, 64], strides = [1, 1]} : vector<16x256xf32> to vector<16x64xf32>
    %22 = vector.extract_strided_slice %19 {offsets = [0, 64], sizes = [16, 64], strides = [1, 1]} : vector<16x256xf32> to vector<16x64xf32>
    %23 = vector.extract_strided_slice %20 {offsets = [0, 128], sizes = [16, 64], strides = [1, 1]} : vector<16x256xf32> to vector<16x64xf32>
    %24 = vector.extract_strided_slice %19 {offsets = [0, 192], sizes = [16, 64], strides = [1, 1]} : vector<16x256xf32> to vector<16x64xf32>
    %25 = arith.mulf %22, %10 : vector<16x64xf32>
    %26 = arith.mulf %21, %23 : vector<16x64xf32>
    %27 = arith.addf %25, %26 : vector<16x64xf32>
    %28 = math.tanh %27 : vector<16x64xf32>
    %29 = arith.mulf %24, %28 : vector<16x64xf32>
    %c32_i32 = arith.constant 32 : i32
    %30 = vector.broadcast %c32_i32 : i32 to vector<16x64xi32>
    %31 = arith.cmpi slt, %11, %30 : vector<16x64xi32>
    %32 = arith.select %31, %27, %10 : vector<16x64xi1>, vector<16x64xf32>
    %33 = arith.select %31, %29, %9 : vector<16x64xi1>, vector<16x64xf32>
    %c16 = arith.constant 16 : index
    %c0_19 = arith.constant 0 : index
    %34 = vector.load %arg9[%c16, %c0_19] : memref<128x256xf32, #tpu.memory_space<vmem>>, vector<16x256xf32>
    %cst_20 = arith.constant dense<0.000000e+00> : vector<16x256xf32>
    %35 = tpu.matmul %33, %7, %cst_20 {dimension_numbers = #tpu.dot_dimension_numbers<[1], [0], [0], [1], [0, 0, 1, 1], [], []>} : vector<16x64xf32>, vector<64x256xf32>, vector<16x256xf32> -> vector<16x256xf32>
    %36 = arith.addf %34, %35 : vector<16x256xf32>
    %37 = arith.negf %36 : vector<16x256xf32>
    %38 = math.exp %37 : vector<16x256xf32>
    %cst_21 = arith.constant 1.000000e+00 : f32
    %39 = vector.broadcast %cst_21 : f32 to vector<16x256xf32>
    %40 = arith.addf %39, %38 : vector<16x256xf32>
    %41 = arith.divf %39, %40 : vector<16x256xf32>
    %42 = math.tanh %36 : vector<16x256xf32>
    %43 = vector.extract_strided_slice %41 {offsets = [0, 0], sizes = [16, 64], strides = [1, 1]} : vector<16x256xf32> to vector<16x64xf32>
    %44 = vector.extract_strided_slice %41 {offsets = [0, 64], sizes = [16, 64], strides = [1, 1]} : vector<16x256xf32> to vector<16x64xf32>
    %45 = vector.extract_strided_slice %42 {offsets = [0, 128], sizes = [16, 64], strides = [1, 1]} : vector<16x256xf32> to vector<16x64xf32>
    %46 = vector.extract_strided_slice %41 {offsets = [0, 192], sizes = [16, 64], strides = [1, 1]} : vector<16x256xf32> to vector<16x64xf32>
    %47 = arith.mulf %44, %32 : vector<16x64xf32>
    %48 = arith.mulf %43, %45 : vector<16x64xf32>
    %49 = arith.addf %47, %48 : vector<16x64xf32>
    %50 = math.tanh %49 : vector<16x64xf32>
    %51 = arith.mulf %46, %50 : vector<16x64xf32>
    %52 = vector.extract_strided_slice %51 {offsets = [0, 32], sizes = [16, 32], strides = [1, 1]} : vector<16x64xf32> to vector<16x32xf32>
    %c0_22 = arith.constant 0 : index
    %c0_23 = arith.constant 0 : index
    %53 = vector.load %arg10[%c0_22, %c0_23] : memref<128x32xf32, #tpu.memory_space<vmem>>, vector<16x32xf32>
    tpu.vector_store %arg10[%c0_22, %c0_23], %52 {strides = array<i32>} : memref<128x32xf32, #tpu.memory_space<vmem>>, vector<16x32xf32>,
    %c32 = arith.constant 32 : index
    %c0_24 = arith.constant 0 : index
    %54 = vector.load %arg9[%c32, %c0_24] : memref<128x256xf32, #tpu.memory_space<vmem>>, vector<16x256xf32>
    %cst_25 = arith.constant dense<0.000000e+00> : vector<16x256xf32>
    %55 = tpu.matmul %51, %7, %cst_25 {dimension_numbers = #tpu.dot_dimension_numbers<[1], [0], [0], [1], [0, 0, 1, 1], [], []>} : vector<16x64xf32>, vector<64x256xf32>, vector<16x256xf32> -> vector<16x256xf32>
    %56 = arith.addf %54, %55 : vector<16x256xf32>
    %57 = arith.negf %56 : vector<16x256xf32>
    %58 = math.exp %57 : vector<16x256xf32>
    %cst_26 = arith.constant 1.000000e+00 : f32
    %59 = vector.broadcast %cst_26 : f32 to vector<16x256xf32>
    %60 = arith.addf %59, %58 : vector<16x256xf32>
    %61 = arith.divf %59, %60 : vector<16x256xf32>
    %62 = math.tanh %56 : vector<16x256xf32>
    %63 = vector.extract_strided_slice %61 {offsets = [0, 0], sizes = [16, 64], strides = [1, 1]} : vector<16x256xf32> to vector<16x64xf32>
    %64 = vector.extract_strided_slice %61 {offsets = [0, 64], sizes = [16, 64], strides = [1, 1]} : vector<16x256xf32> to vector<16x64xf32>
    %65 = vector.extract_strided_slice %62 {offsets = [0, 128], sizes = [16, 64], strides = [1, 1]} : vector<16x256xf32> to vector<16x64xf32>
    %66 = vector.extract_strided_slice %61 {offsets = [0, 192], sizes = [16, 64], strides = [1, 1]} : vector<16x256xf32> to vector<16x64xf32>
    %67 = arith.mulf %64, %49 : vector<16x64xf32>
    %68 = arith.mulf %63, %65 : vector<16x64xf32>
    %69 = arith.addf %67, %68 : vector<16x64xf32>
    %70 = math.tanh %69 : vector<16x64xf32>
    %71 = arith.mulf %66, %70 : vector<16x64xf32>
    %72 = vector.extract_strided_slice %71 {offsets = [0, 32], sizes = [16, 32], strides = [1, 1]} : vector<16x64xf32> to vector<16x32xf32>
    %c16_27 = arith.constant 16 : index
    %c0_28 = arith.constant 0 : index
    %73 = vector.load %arg10[%c16_27, %c0_28] : memref<128x32xf32, #tpu.memory_space<vmem>>, vector<16x32xf32>
    tpu.vector_store %arg10[%c16_27, %c0_28], %72 {strides = array<i32>} : memref<128x32xf32, #tpu.memory_space<vmem>>, vector<16x32xf32>,
    %c48 = arith.constant 48 : index
    %c0_29 = arith.constant 0 : index
    %74 = vector.load %arg9[%c48, %c0_29] : memref<128x256xf32, #tpu.memory_space<vmem>>, vector<16x256xf32>
    %cst_30 = arith.constant dense<0.000000e+00> : vector<16x256xf32>
    %75 = tpu.matmul %71, %7, %cst_30 {dimension_numbers = #tpu.dot_dimension_numbers<[1], [0], [0], [1], [0, 0, 1, 1], [], []>} : vector<16x64xf32>, vector<64x256xf32>, vector<16x256xf32> -> vector<16x256xf32>
    %76 = arith.addf %74, %75 : vector<16x256xf32>
    %77 = arith.negf %76 : vector<16x256xf32>
    %78 = math.exp %77 : vector<16x256xf32>
    %cst_31 = arith.constant 1.000000e+00 : f32
    %79 = vector.broadcast %cst_31 : f32 to vector<16x256xf32>
    %80 = arith.addf %79, %78 : vector<16x256xf32>
    %81 = arith.divf %79, %80 : vector<16x256xf32>
    %82 = math.tanh %76 : vector<16x256xf32>
    %83 = vector.extract_strided_slice %81 {offsets = [0, 0], sizes = [16, 64], strides = [1, 1]} : vector<16x256xf32> to vector<16x64xf32>
    %84 = vector.extract_strided_slice %81 {offsets = [0, 64], sizes = [16, 64], strides = [1, 1]} : vector<16x256xf32> to vector<16x64xf32>
    %85 = vector.extract_strided_slice %82 {offsets = [0, 128], sizes = [16, 64], strides = [1, 1]} : vector<16x256xf32> to vector<16x64xf32>
    %86 = vector.extract_strided_slice %81 {offsets = [0, 192], sizes = [16, 64], strides = [1, 1]} : vector<16x256xf32> to vector<16x64xf32>
    %87 = arith.mulf %84, %69 : vector<16x64xf32>
    %88 = arith.mulf %83, %85 : vector<16x64xf32>
    %89 = arith.addf %87, %88 : vector<16x64xf32>
    %90 = math.tanh %89 : vector<16x64xf32>
    %91 = arith.mulf %86, %90 : vector<16x64xf32>
    %92 = vector.extract_strided_slice %91 {offsets = [0, 32], sizes = [16, 32], strides = [1, 1]} : vector<16x64xf32> to vector<16x32xf32>
    %c32_32 = arith.constant 32 : index
    %c0_33 = arith.constant 0 : index
    %93 = vector.load %arg10[%c32_32, %c0_33] : memref<128x32xf32, #tpu.memory_space<vmem>>, vector<16x32xf32>
    tpu.vector_store %arg10[%c32_32, %c0_33], %92 {strides = array<i32>} : memref<128x32xf32, #tpu.memory_space<vmem>>, vector<16x32xf32>,
    %c64 = arith.constant 64 : index
    %c0_34 = arith.constant 0 : index
    %94 = vector.load %arg9[%c64, %c0_34] : memref<128x256xf32, #tpu.memory_space<vmem>>, vector<16x256xf32>
    %cst_35 = arith.constant dense<0.000000e+00> : vector<16x256xf32>
    %95 = tpu.matmul %91, %7, %cst_35 {dimension_numbers = #tpu.dot_dimension_numbers<[1], [0], [0], [1], [0, 0, 1, 1], [], []>} : vector<16x64xf32>, vector<64x256xf32>, vector<16x256xf32> -> vector<16x256xf32>
    %96 = arith.addf %94, %95 : vector<16x256xf32>
    %97 = arith.negf %96 : vector<16x256xf32>
    %98 = math.exp %97 : vector<16x256xf32>
    %cst_36 = arith.constant 1.000000e+00 : f32
    %99 = vector.broadcast %cst_36 : f32 to vector<16x256xf32>
    %100 = arith.addf %99, %98 : vector<16x256xf32>
    %101 = arith.divf %99, %100 : vector<16x256xf32>
    %102 = math.tanh %96 : vector<16x256xf32>
    %103 = vector.extract_strided_slice %101 {offsets = [0, 0], sizes = [16, 64], strides = [1, 1]} : vector<16x256xf32> to vector<16x64xf32>
    %104 = vector.extract_strided_slice %101 {offsets = [0, 64], sizes = [16, 64], strides = [1, 1]} : vector<16x256xf32> to vector<16x64xf32>
    %105 = vector.extract_strided_slice %102 {offsets = [0, 128], sizes = [16, 64], strides = [1, 1]} : vector<16x256xf32> to vector<16x64xf32>
    %106 = vector.extract_strided_slice %101 {offsets = [0, 192], sizes = [16, 64], strides = [1, 1]} : vector<16x256xf32> to vector<16x64xf32>
    %107 = arith.mulf %104, %89 : vector<16x64xf32>
    %108 = arith.mulf %103, %105 : vector<16x64xf32>
    %109 = arith.addf %107, %108 : vector<16x64xf32>
    %110 = math.tanh %109 : vector<16x64xf32>
    %111 = arith.mulf %106, %110 : vector<16x64xf32>
    %112 = vector.extract_strided_slice %111 {offsets = [0, 32], sizes = [16, 32], strides = [1, 1]} : vector<16x64xf32> to vector<16x32xf32>
    %c48_37 = arith.constant 48 : index
    %c0_38 = arith.constant 0 : index
    %113 = vector.load %arg10[%c48_37, %c0_38] : memref<128x32xf32, #tpu.memory_space<vmem>>, vector<16x32xf32>
    tpu.vector_store %arg10[%c48_37, %c0_38], %112 {strides = array<i32>} : memref<128x32xf32, #tpu.memory_space<vmem>>, vector<16x32xf32>,
    %c80 = arith.constant 80 : index
    %c0_39 = arith.constant 0 : index
    %114 = vector.load %arg9[%c80, %c0_39] : memref<128x256xf32, #tpu.memory_space<vmem>>, vector<16x256xf32>
    %cst_40 = arith.constant dense<0.000000e+00> : vector<16x256xf32>
    %115 = tpu.matmul %111, %7, %cst_40 {dimension_numbers = #tpu.dot_dimension_numbers<[1], [0], [0], [1], [0, 0, 1, 1], [], []>} : vector<16x64xf32>, vector<64x256xf32>, vector<16x256xf32> -> vector<16x256xf32>
    %116 = arith.addf %114, %115 : vector<16x256xf32>
    %117 = arith.negf %116 : vector<16x256xf32>
    %118 = math.exp %117 : vector<16x256xf32>
    %cst_41 = arith.constant 1.000000e+00 : f32
    %119 = vector.broadcast %cst_41 : f32 to vector<16x256xf32>
    %120 = arith.addf %119, %118 : vector<16x256xf32>
    %121 = arith.divf %119, %120 : vector<16x256xf32>
    %122 = math.tanh %116 : vector<16x256xf32>
    %123 = vector.extract_strided_slice %121 {offsets = [0, 0], sizes = [16, 64], strides = [1, 1]} : vector<16x256xf32> to vector<16x64xf32>
    %124 = vector.extract_strided_slice %121 {offsets = [0, 64], sizes = [16, 64], strides = [1, 1]} : vector<16x256xf32> to vector<16x64xf32>
    %125 = vector.extract_strided_slice %122 {offsets = [0, 128], sizes = [16, 64], strides = [1, 1]} : vector<16x256xf32> to vector<16x64xf32>
    %126 = vector.extract_strided_slice %121 {offsets = [0, 192], sizes = [16, 64], strides = [1, 1]} : vector<16x256xf32> to vector<16x64xf32>
    %127 = arith.mulf %124, %109 : vector<16x64xf32>
    %128 = arith.mulf %123, %125 : vector<16x64xf32>
    %129 = arith.addf %127, %128 : vector<16x64xf32>
    %130 = math.tanh %129 : vector<16x64xf32>
    %131 = arith.mulf %126, %130 : vector<16x64xf32>
    %132 = vector.extract_strided_slice %131 {offsets = [0, 32], sizes = [16, 32], strides = [1, 1]} : vector<16x64xf32> to vector<16x32xf32>
    %c64_42 = arith.constant 64 : index
    %c0_43 = arith.constant 0 : index
    %133 = vector.load %arg10[%c64_42, %c0_43] : memref<128x32xf32, #tpu.memory_space<vmem>>, vector<16x32xf32>
    tpu.vector_store %arg10[%c64_42, %c0_43], %132 {strides = array<i32>} : memref<128x32xf32, #tpu.memory_space<vmem>>, vector<16x32xf32>,
    %c96 = arith.constant 96 : index
    %c0_44 = arith.constant 0 : index
    %134 = vector.load %arg9[%c96, %c0_44] : memref<128x256xf32, #tpu.memory_space<vmem>>, vector<16x256xf32>
    %cst_45 = arith.constant dense<0.000000e+00> : vector<16x256xf32>
    %135 = tpu.matmul %131, %7, %cst_45 {dimension_numbers = #tpu.dot_dimension_numbers<[1], [0], [0], [1], [0, 0, 1, 1], [], []>} : vector<16x64xf32>, vector<64x256xf32>, vector<16x256xf32> -> vector<16x256xf32>
    %136 = arith.addf %134, %135 : vector<16x256xf32>
    %137 = arith.negf %136 : vector<16x256xf32>
    %138 = math.exp %137 : vector<16x256xf32>
    %cst_46 = arith.constant 1.000000e+00 : f32
    %139 = vector.broadcast %cst_46 : f32 to vector<16x256xf32>
    %140 = arith.addf %139, %138 : vector<16x256xf32>
    %141 = arith.divf %139, %140 : vector<16x256xf32>
    %142 = math.tanh %136 : vector<16x256xf32>
    %143 = vector.extract_strided_slice %141 {offsets = [0, 0], sizes = [16, 64], strides = [1, 1]} : vector<16x256xf32> to vector<16x64xf32>
    %144 = vector.extract_strided_slice %141 {offsets = [0, 64], sizes = [16, 64], strides = [1, 1]} : vector<16x256xf32> to vector<16x64xf32>
    %145 = vector.extract_strided_slice %142 {offsets = [0, 128], sizes = [16, 64], strides = [1, 1]} : vector<16x256xf32> to vector<16x64xf32>
    %146 = vector.extract_strided_slice %141 {offsets = [0, 192], sizes = [16, 64], strides = [1, 1]} : vector<16x256xf32> to vector<16x64xf32>
    %147 = arith.mulf %144, %129 : vector<16x64xf32>
    %148 = arith.mulf %143, %145 : vector<16x64xf32>
    %149 = arith.addf %147, %148 : vector<16x64xf32>
    %150 = math.tanh %149 : vector<16x64xf32>
    %151 = arith.mulf %146, %150 : vector<16x64xf32>
    %152 = vector.extract_strided_slice %151 {offsets = [0, 32], sizes = [16, 32], strides = [1, 1]} : vector<16x64xf32> to vector<16x32xf32>
    %c80_47 = arith.constant 80 : index
    %c0_48 = arith.constant 0 : index
    %153 = vector.load %arg10[%c80_47, %c0_48] : memref<128x32xf32, #tpu.memory_space<vmem>>, vector<16x32xf32>
    tpu.vector_store %arg10[%c80_47, %c0_48], %152 {strides = array<i32>} : memref<128x32xf32, #tpu.memory_space<vmem>>, vector<16x32xf32>,
    %c112 = arith.constant 112 : index
    %c0_49 = arith.constant 0 : index
    %154 = vector.load %arg9[%c112, %c0_49] : memref<128x256xf32, #tpu.memory_space<vmem>>, vector<16x256xf32>
    %cst_50 = arith.constant dense<0.000000e+00> : vector<16x256xf32>
    %155 = tpu.matmul %151, %7, %cst_50 {dimension_numbers = #tpu.dot_dimension_numbers<[1], [0], [0], [1], [0, 0, 1, 1], [], []>} : vector<16x64xf32>, vector<64x256xf32>, vector<16x256xf32> -> vector<16x256xf32>
    %156 = arith.addf %154, %155 : vector<16x256xf32>
    %157 = arith.negf %156 : vector<16x256xf32>
    %158 = math.exp %157 : vector<16x256xf32>
    %cst_51 = arith.constant 1.000000e+00 : f32
    %159 = vector.broadcast %cst_51 : f32 to vector<16x256xf32>
    %160 = arith.addf %159, %158 : vector<16x256xf32>
    %161 = arith.divf %159, %160 : vector<16x256xf32>
    %162 = math.tanh %156 : vector<16x256xf32>
    %163 = vector.extract_strided_slice %161 {offsets = [0, 0], sizes = [16, 64], strides = [1, 1]} : vector<16x256xf32> to vector<16x64xf32>
    %164 = vector.extract_strided_slice %161 {offsets = [0, 64], sizes = [16, 64], strides = [1, 1]} : vector<16x256xf32> to vector<16x64xf32>
    %165 = vector.extract_strided_slice %162 {offsets = [0, 128], sizes = [16, 64], strides = [1, 1]} : vector<16x256xf32> to vector<16x64xf32>
    %166 = vector.extract_strided_slice %161 {offsets = [0, 192], sizes = [16, 64], strides = [1, 1]} : vector<16x256xf32> to vector<16x64xf32>
    %167 = arith.mulf %164, %149 : vector<16x64xf32>
    %168 = arith.mulf %163, %165 : vector<16x64xf32>
    %169 = arith.addf %167, %168 : vector<16x64xf32>
    %170 = math.tanh %169 : vector<16x64xf32>
    %171 = arith.mulf %166, %170 : vector<16x64xf32>
    %172 = vector.extract_strided_slice %171 {offsets = [0, 32], sizes = [16, 32], strides = [1, 1]} : vector<16x64xf32> to vector<16x32xf32>
    %c96_52 = arith.constant 96 : index
    %c0_53 = arith.constant 0 : index
    %173 = vector.load %arg10[%c96_52, %c0_53] : memref<128x32xf32, #tpu.memory_space<vmem>>, vector<16x32xf32>
    tpu.vector_store %arg10[%c96_52, %c0_53], %172 {strides = array<i32>} : memref<128x32xf32, #tpu.memory_space<vmem>>, vector<16x32xf32>,
    %cst_54 = arith.constant dense<0.000000e+00> : vector<16x256xf32>
    %174 = tpu.matmul %171, %7, %cst_54 {dimension_numbers = #tpu.dot_dimension_numbers<[1], [0], [0], [1], [0, 0, 1, 1], [], []>} : vector<16x64xf32>, vector<64x256xf32>, vector<16x256xf32> -> vector<16x256xf32>
    %175 = vector.broadcast %8 : vector<1x256xf32> to vector<16x256xf32>
    %176 = arith.addf %175, %174 : vector<16x256xf32>
    %177 = arith.negf %176 : vector<16x256xf32>
    %178 = math.exp %177 : vector<16x256xf32>
    %cst_55 = arith.constant 1.000000e+00 : f32
    %179 = vector.broadcast %cst_55 : f32 to vector<16x256xf32>
    %180 = arith.addf %179, %178 : vector<16x256xf32>
    %181 = arith.divf %179, %180 : vector<16x256xf32>
    %182 = math.tanh %176 : vector<16x256xf32>
    %183 = vector.extract_strided_slice %181 {offsets = [0, 0], sizes = [16, 64], strides = [1, 1]} : vector<16x256xf32> to vector<16x64xf32>
    %184 = vector.extract_strided_slice %181 {offsets = [0, 64], sizes = [16, 64], strides = [1, 1]} : vector<16x256xf32> to vector<16x64xf32>
    %185 = vector.extract_strided_slice %182 {offsets = [0, 128], sizes = [16, 64], strides = [1, 1]} : vector<16x256xf32> to vector<16x64xf32>
    %186 = vector.extract_strided_slice %181 {offsets = [0, 192], sizes = [16, 64], strides = [1, 1]} : vector<16x256xf32> to vector<16x64xf32>
    %187 = arith.mulf %184, %169 : vector<16x64xf32>
    %188 = arith.mulf %183, %185 : vector<16x64xf32>
    %189 = arith.addf %187, %188 : vector<16x64xf32>
    %190 = math.tanh %189 : vector<16x64xf32>
    %191 = arith.mulf %186, %190 : vector<16x64xf32>
    %192 = vector.extract_strided_slice %191 {offsets = [0, 32], sizes = [16, 32], strides = [1, 1]} : vector<16x64xf32> to vector<16x32xf32>
    %c112_56 = arith.constant 112 : index
    %c0_57 = arith.constant 0 : index
    %193 = vector.load %arg10[%c112_56, %c0_57] : memref<128x32xf32, #tpu.memory_space<vmem>>, vector<16x32xf32>
    tpu.vector_store %arg10[%c112_56, %c0_57], %192 {strides = array<i32>} : memref<128x32xf32, #tpu.memory_space<vmem>>, vector<16x32xf32>,
    %c0_58 = arith.constant 0 : index
    %c0_59 = arith.constant 0 : index
    %194 = vector.load %arg10[%c0_58, %c0_59] : memref<128x32xf32, #tpu.memory_space<vmem>>, vector<128x32xf32>
    %c0_60 = arith.constant 0 : index
    %c0_61 = arith.constant 0 : index
    %195 = vector.load %arg4[%c0_60, %c0_61] : memref<32x128xf32, #tpu.memory_space<vmem>>, vector<32x128xf32>
    %cst_62 = arith.constant dense<0.000000e+00> : vector<128x128xf32>
    %196 = tpu.matmul %194, %195, %cst_62 {dimension_numbers = #tpu.dot_dimension_numbers<[1], [0], [0], [1], [0, 0, 1, 1], [], []>} : vector<128x32xf32>, vector<32x128xf32>, vector<128x128xf32> -> vector<128x128xf32>
    %c0_63 = arith.constant 0 : index
    %c0_64 = arith.constant 0 : index
    %197 = vector.load %arg5[%c0_63, %c0_64] : memref<1x128xf32, #tpu.memory_space<vmem>>, vector<1x128xf32>
    %198 = vector.broadcast %197 : vector<1x128xf32> to vector<128x128xf32>
    %199 = arith.addf %196, %198 : vector<128x128xf32>
    %c0_65 = arith.constant 0 : index
    %c0_66 = arith.constant 0 : index
    %200 = vector.load %arg8[%c0_65, %c0_66] : memref<128x128xf32, #tpu.memory_space<vmem>>, vector<128x128xf32>
    tpu.vector_store %arg8[%c0_65, %c0_66], %199 {strides = array<i32>} : memref<128x128xf32, #tpu.memory_space<vmem>>, vector<128x128xf32>,
    return
  }
}

</mosaic_0001>

<bundles_post_ra>
// kernel: lstm_for_mls_forward.1
= control target key start
LH: loop header
LB: loop body
LE: loop exit
PB: predicated region body
PF: predicated region fallthrough
CT: control target
= control target key end

     0   :  { %v2422_v1 = vmov 0   ;;  %v2423_v2 = vmov 0.0   ;;  %vm110_vm0 = vcmask 130048   ;;  %vm307_vm1 = vcmask 523264   ;;  %s2425_s26 = smov 32   ;;  %s3124_s1 = inlined_call_operand.vmem [shape: bf16[16,256], index: 1, kind: input, shape index: {}]   ;;  %s3125_s0 = inlined_call_operand.vmem [shape: bf16[128,16], index: 0, kind: input, shape index: {}]   ;;  %s3126_s2 = inlined_call_operand.vmem [shape: f32[64,256], index: 2, kind: input, shape index: {}]   ;;  %s3127_s7 = inlined_call_operand.vmem [shape: f32[16,64], index: 7, kind: input, shape index: {}]   ;;  %s3128_s6 = inlined_call_operand.vmem [shape: f32[16,64], index: 6, kind: input, shape index: {}]   ;;  %s3129_s3 = inlined_call_operand.vmem [shape: f32[1,256], index: 3, kind: input, shape index: {}]   ;;  %s3130_s4 = inlined_call_operand.vmem [shape: f32[32,128], index: 4, kind: input, shape index: {}]   ;;  %s3131_s5 = inlined_call_operand.vmem [shape: f32[1,128], index: 5, kind: input, shape index: {}]   ;;  %s3132_s8 = inlined_call_operand.vmem [shape: f32[128,128], index: 8, kind: output, shape index: {}]  }
   0x1   :  { %v2195_v0 = vld [vmem:[%s3124_s1 + $0x4] ss:$8 sps:$4 sm:$0xff]   ;;  %167 = vmatprep.mubr.bf16.mxu0 %v2422_v1  ;;  %542 = vmatprep.mubr.f32.mxu1 %v2423_v2  ;;  %v2197_v3 = vld [vmem:[%s3124_s1] ss:$8 sps:$4 sm:$0xff]   ;;  %v283_v6 = vld [vmem:[%s3126_s2 + $0x18] sm:$0xff]  ;;  %v50_v40 = vlaneseq  ;;  %vm619_vm3 = vcmask 261120  }
   0x2   :  { %135 = vmatprep.subr.bf16.mxu0 %v2195_v0  ;;  %v2198_v4 = vld [vmem:[%s3125_s0] sm:$0xff]   ;;  %v281_v5 = vld [vmem:[%s3126_s2 + $0x8] sm:$0xff]  ;;  %v282_v9 = vld [vmem:[%s3126_s2 + $0x10] sm:$0xff] }
   0x3   :  { %136 = vmatpush1.bf16.msra.mxu0 %v2197_v3  ;;  %v2488_v7 = vpack.c.bf16 %v283_v6, %v281_v5  ;;  %v280_v8 = vld [vmem:[%s3126_s2] sm:$0xff]  ;;  %v285_v11 = vld [vmem:[%s3126_s2 + $0x28] sm:$0xff]  ;;  %v287_v12 = vld [vmem:[%s3126_s2 + $0x38] sm:$0xff]  ;;  %v2640_v41 = vshrl.u32 %v50_v40, 7 }
   0x4   :  { %v2496_v10 = vpack.c.bf16 %v282_v9, %v280_v8  ;;  %v284_v13 = vld [vmem:[%s3126_s2 + $0x20] sm:$0xff]  ;;  %v286_v14 = vld [vmem:[%s3126_s2 + $0x30] sm:$0xff]  ;;  %v2516_v15 = vpack.c.bf16 %v287_v12, %v285_v11  ;;  %v2199_v17 = vld [vmem:[%s3125_s0 + $0x8] sm:$0xff]  }
   0x5   :  { %2040 = vmatprep.subr.bf16.mxu0 %v2488_v7  ;;  %2056 = vmatprep.subr.bf16.mxu1 %v2488_v7  ;;  %v2518_v16 = vpack.c.bf16 %v286_v14, %v284_v13  ;;  %v289_v18 = vld [vmem:[%s3126_s2 + $0x48] sm:$0xff]  ;;  %v291_v19 = vld [vmem:[%s3126_s2 + $0x58] sm:$0xff]  ;;  %v288_v20 = vld [vmem:[%s3126_s2 + $0x40] sm:$0xff]  ;;  %v52_v45 = vsub.s32 0, %v2640_v41  ;;  %v3133_v48 = vsub.s32 1, %v2640_v41 }
   0x6   :  { %1908 = vmatmul.mubr.msk.bf16.vlgmr.msra.gmra.mrb[0].mxu0 %vm110_vm0, %v2198_v4  ;;  %2058 = vmatpush1.bf16.msra.mxu1 %v2496_v10  ;;  %v2534_v21 = vpack.c.bf16 %v291_v19, %v289_v18  ;;  %v290_v22 = vld [vmem:[%s3126_s2 + $0x50] sm:$0xff]  ;;  %v293_v24 = vld [vmem:[%s3126_s2 + $0x68] sm:$0xff]  ;;  %v295_v25 = vld [vmem:[%s3126_s2 + $0x78] sm:$0xff] }
   0x7   :  { %2042 = vmatpush1.bf16.msra.mxu0 %v2496_v10  ;;  %177 = vmatprep.mubr.bf16.mxu0 %v2422_v1  ;;  %v2541_v23 = vpack.c.bf16 %v290_v22, %v288_v20  ;;  %v2551_v26 = vpack.c.bf16 %v295_v25, %v293_v24  ;;  %v292_v27 = vld [vmem:[%s3126_s2 + $0x60] sm:$0xff]  ;;  %v294_v28 = vld [vmem:[%s3126_s2 + $0x70] sm:$0xff]  ;;  %v2573_v31 = vld [vmem:[%s3127_s7 + $0x8] sm:$0xff]  ;;  %s2424_s2 = smov 64  }
   0x8   :  { %2044 = vmatprep.subr.bf16.mxu0 %v2516_v15  ;;  %2060 = vmatprep.subr.bf16.mxu1 %v2516_v15  ;;  %v2563_v29 = vpack.c.bf16 %v294_v28, %v292_v27  ;;  %v2568_v30 = vld [vmem:[%s3127_s7] sm:$0xff]  ;;  %v2200_v32 = vld [vmem:[%s3125_s0 + $0x10] sm:$0xff]   ;;  %v2201_v33 = vld [vmem:[%s3125_s0 + $0x18] sm:$0xff]  }
   0x9   :  { %423 = vrot.lane.b32.xlu0 %v2568_v30, %s2424_s2  ;;  %425 = vrot.lane.b32.xlu1 %v2573_v31, %s2424_s2  ;;  %v2202_v34 = vld [vmem:[%s3125_s0 + $0x20] sm:$0xff]   ;;  %v2203_v35 = vld [vmem:[%s3125_s0 + $0x28] sm:$0xff]  }
   0xa   :  { %2062 = vmatpush1.bf16.msra.mxu1 %v2518_v16  ;;  %v2204_v36 = vld [vmem:[%s3125_s0 + $0x30] sm:$0xff]   ;;  %v2205_v37 = vld [vmem:[%s3125_s0 + $0x38] sm:$0xff]   ;;  %v2618_v38 = vld [vmem:[%s3128_s6] sm:$0xff] }
   0xb   :  { %2046 = vmatpush1.bf16.msra.mxu0 %v2518_v16  ;;  %2064 = vmatprep.subr.bf16.mxu1 %v2534_v21  ;;  %v2626_v39 = vld [vmem:[%s3128_s6 + $0x8] sm:$0xff]  ;;  %v48_v47 = vld [vmem:[%s3129_s3] sm:$0x3] }
   0xc   :  { %2048 = vmatprep.subr.bf16.mxu0 %v2534_v21  ;;  %v2657_v49 = vrot.slane %v48_v47, %v52_v45  ;;  %v2661_v50 = vrot.slane %v48_v47, %v3133_v48 }
   0xe   :  { %1909 = vmatmul.mubr.msk.bf16.gmra.mrb[4].mxu0 %vm110_vm0, %v2199_v17  ;;  %2066 = vmatpush1.bf16.msra.mxu1 %v2541_v23 }
   0xf   :  { %187 = vmatprep.mubr.bf16.mxu0 %v2422_v1  ;;  %2050 = vmatpush1.bf16.msra.mxu0 %v2541_v23 }
  0x10   :  { %2052 = vmatprep.subr.bf16.mxu0 %v2551_v26  ;;  %2068 = vmatprep.subr.bf16.mxu1 %v2551_v26 }
  0x12   :  { %2070 = vmatpush1.bf16.msra.mxu1 %v2563_v29 }
  0x13   :  { %2054 = vmatpush1.bf16.msra.mxu0 %v2563_v29  ;;  %2072 = vmatprep.subr.bf16.mxu1 %v2488_v7 }
  0x14   :  { %2104 = vmatprep.subr.bf16.mxu0 %v2488_v7 }
  0x16   :  { %1910 = vmatmul.mubr.msk.bf16.gmra.mrb[8].mxu0 %vm110_vm0, %v2200_v32 }
  0x17   :  { %197 = vmatprep.mubr.bf16.mxu0 %v2422_v1 }
  0x1e   :  { %1911 = vmatmul.mubr.msk.bf16.gmra.mrb[12].mxu0 %vm110_vm0, %v2201_v33 }
  0x1f   :  { %207 = vmatprep.mubr.bf16.mxu0 %v2422_v1 }
  0x26   :  { %1912 = vmatmul.mubr.msk.bf16.gmra.mrb[16].mxu0 %vm110_vm0, %v2202_v34 }
  0x27   :  { %217 = vmatprep.mubr.bf16.mxu0 %v2422_v1 }
  0x2e   :  { %1913 = vmatmul.mubr.msk.bf16.gmra.mrb[20].mxu0 %vm110_vm0, %v2203_v35 }
  0x2f   :  { %227 = vmatprep.mubr.bf16.mxu0 %v2422_v1 }
  0x36   :  { %1914 = vmatmul.mubr.msk.bf16.gmra.mrb[24].mxu0 %vm110_vm0, %v2204_v36 }
  0x37   :  { %237 = vmatprep.mubr.bf16.mxu0 %v2422_v1 }
  0x3e   :  { %1915 = vmatmul.mubr.msk.bf16.gmra.mrb[28].mxu0 %vm110_vm0, %v2205_v37 }
  0x3f   :  { %378 = vmatprep.mubr.f32.mxu0 %v2423_v2 }
  0x46   :  { %1916 = vmatmul.mubr.msk.f32.vlgmr.msra.gmra.mrb[32].mxu0 %vm307_vm1, %v2618_v38 }
  0x47   :  { %384 = vmatprep.mubr.f32.mxu0 %v2423_v2  ;;  %2106 = vmatpush1.bf16.msra.mxu0 %v2496_v10 }
  0x48   :  { %2108 = vmatprep.subr.bf16.mxu0 %v2516_v15 }
  0x4a   :  { %1917 = vmatmul.mubr.msk.f32.gmra.mrb[34].mxu0 %vm307_vm1, %v2626_v39 }
  0x4b   :  { %2110 = vmatpush1.bf16.msra.mxu0 %v2518_v16  ;;  %992 = vmatprep.mubr.f32.mxu0 %v2423_v2 }
  0x4c   :  { %2112 = vmatprep.subr.bf16.mxu0 %v2534_v21 }
  0x4f   :  { %2114 = vmatpush1.bf16.msra.mxu0 %v2541_v23 }
  0x50   :  { %2116 = vmatprep.subr.bf16.mxu0 %v2551_v26 }
  0x53   :  { %2118 = vmatpush1.bf16.msra.mxu0 %v2563_v29 }
  0x54   :  { %2136 = vmatprep.subr.bf16.mxu0 %v2488_v7 }
  0xd9   :  { %v2642_v42 = vpop.f32.mrb[0].mxu0 }
  0xda   :  { %v2644_v43 = vpop.f32.mrb[1].mxu0 }
  0xdb   :  { %v2646_v44 = vpop.f32.mrb[2].mxu0 }
  0xdc   :  { %v2649_v46 = vpop.f32.mrb[3].mxu0 }
  0xe1   :  { %v179_v51 = vpop.f32.mrb[4].mxu0 }
  0xe2   :  { %v2664_v52 = vadd.f32 %v179_v51, %v2657_v49  ;;  %v181_v53 = vpop.f32.mrb[5].mxu0 }
  0xe3   :  { %v2667_v54 = vadd.f32 %v181_v53, %v2661_v50  ;;  %v183_v55 = vpop.f32.mrb[6].mxu0 }
  0xe4   :  { %v2670_v56 = vadd.f32 %v183_v55, %v2657_v49  ;;  %v185_v57 = vpop.f32.mrb[7].mxu0 }
  0xe5   :  { %v2673_v58 = vadd.f32 %v185_v57, %v2661_v50 }
  0xe9   :  { %v189_v59 = vpop.f32.mrb[8].mxu0 }
  0xea   :  { %v2676_v60 = vadd.f32 %v189_v59, %v2657_v49  ;;  %v191_v61 = vpop.f32.mrb[9].mxu0 }
  0xeb   :  { %v2679_v62 = vadd.f32 %v191_v61, %v2661_v50  ;;  %v193_v63 = vpop.f32.mrb[10].mxu0 }
  0xec   :  { %v2682_v0 = vadd.f32 %v193_v63, %v2657_v49  ;;  %v195_v1 = vpop.f32.mrb[11].mxu0 }
  0xed   :  { %v2685_v3 = vadd.f32 %v195_v1, %v2661_v50 }
  0xf1   :  { %v199_v4 = vpop.f32.mrb[12].mxu0 }
  0xf2   :  { %v2688_v5 = vadd.f32 %v199_v4, %v2657_v49  ;;  %v201_v6 = vpop.f32.mrb[13].mxu0 }
  0xf3   :  { %v2691_v8 = vadd.f32 %v201_v6, %v2661_v50  ;;  %v203_v9 = vpop.f32.mrb[14].mxu0 }
  0xf4   :  { %v2694_v11 = vadd.f32 %v203_v9, %v2657_v49  ;;  %v205_v12 = vpop.f32.mrb[15].mxu0 }
  0xf5   :  { %v2697_v13 = vadd.f32 %v205_v12, %v2661_v50 }
  0xf9   :  { %v209_v14 = vpop.f32.mrb[16].mxu0 }
  0xfa   :  { %v2700_v17 = vadd.f32 %v209_v14, %v2657_v49  ;;  %v211_v18 = vpop.f32.mrb[17].mxu0 }
  0xfb   :  { %v2703_v19 = vadd.f32 %v211_v18, %v2661_v50  ;;  %v213_v20 = vpop.f32.mrb[18].mxu0 }
  0xfc   :  { %v2706_v22 = vadd.f32 %v213_v20, %v2657_v49  ;;  %v215_v24 = vpop.f32.mrb[19].mxu0 }
  0xfd   :  { %v2709_v25 = vadd.f32 %v215_v24, %v2661_v50  ;;  %v170_v24 = vadd.f32 %v2642_v42, %v2657_v49 }
 0x101   :  { %v219_v27 = vpop.f32.mrb[20].mxu0 }
 0x102   :  { %v2712_v28 = vadd.f32 %v219_v27, %v2657_v49  ;;  %v221_v32 = vpop.f32.mrb[21].mxu0  ;;  %v172_v27 = vadd.f32 %v2644_v43, %v2661_v50 }
 0x103   :  { %v2715_v33 = vadd.f32 %v221_v32, %v2661_v50  ;;  %v223_v34 = vpop.f32.mrb[22].mxu0 }
 0x104   :  { %v2718_v35 = vadd.f32 %v223_v34, %v2657_v49  ;;  %v225_v36 = vpop.f32.mrb[23].mxu0 }
 0x105   :  { %v2721_v37 = vadd.f32 %v225_v36, %v2661_v50 }
 0x109   :  { %v229_v47 = vpop.f32.mrb[24].mxu0 }
 0x10a   :  { %v2724_v51 = vadd.f32 %v229_v47, %v2657_v49  ;;  %v231_v53 = vpop.f32.mrb[25].mxu0 }
 0x10b   :  { %v2727_v55 = vadd.f32 %v231_v53, %v2661_v50  ;;  %v233_v57 = vpop.f32.mrb[26].mxu0  ;;  %v174_v53 = vadd.f32 %v2646_v44, %v2657_v49 }
 0x10c   :  { %v2730_v59 = vadd.f32 %v233_v57, %v2657_v49  ;;  %v235_v61 = vpop.f32.mrb[27].mxu0 }
 0x10d   :  { %v2733_v63 = vadd.f32 %v235_v61, %v2661_v50  ;;  %v176_v61 = vadd.f32 %v2649_v46, %v2661_v50 }
 0x111   :  { %v239_v1 = vpop.f32.mrb[28].mxu0 }
 0x112   :  { %v2736_v4 = vadd.f32 %v239_v1, %v2657_v49  ;;  %v241_v6 = vpop.f32.mrb[29].mxu0 }
 0x113   :  { %v2739_v9 = vadd.f32 %v241_v6, %v2661_v50  ;;  %v243_v12 = vpop.f32.mrb[30].mxu0 }
 0x114   :  { %v2742_v14 = vadd.f32 %v243_v12, %v2657_v49  ;;  %v245_v18 = vpop.f32.mrb[31].mxu0 }
 0x115   :  { %v2745_v20 = vadd.f32 %v245_v18, %v2661_v50 }
 0x119   :  { %v380_v32 = vpop.f32.mrb[32].mxu0 }
 0x11a   :  { %v391_v34 = vadd.f32 %v380_v32, %v170_v24  ;;  %v382_v36 = vpop.f32.mrb[33].mxu0 }
 0x11b   :  { %v392_v47 = vadd.f32 %v382_v36, %v172_v27 }
 0x11c   :  { %v1918_v57 = vmul.f32 -1.442695, %v391_v34 }
 0x11d   :  { %v386_v1 = vpop.f32.mrb[34].mxu0  ;;  %v1919_v36 = vmul.f32 -1.442695, %v392_v47 }
 0x11e   :  { %2206 = vpow2.f32 %v1918_v57  ;;  %v393_v6 = vadd.f32 %v386_v1, %v174_v53  ;;  %v388_v12 = vpop.f32.mrb[35].mxu0  ;;  %v424_v57 = vpop.permute.xlu0 %423 }
 0x11f   :  { %v394_v18 = vadd.f32 %v388_v12, %v176_v61  ;;  %v426_v12 = vpop.permute.xlu1 %425 }
 0x120   :  { %v1920_v42 = vmul.f32 -1.442695, %v393_v6 }
 0x121   :  { %v1921_v53 = vmul.f32 -1.442695, %v394_v18 }
 0x122   :  { %2208 = vpow2.f32 %v1920_v42 }
 0x123   :  { %2210 = vtanh.f32 %v392_v47 }
 0x128   :  { %v2207_v48 = vpop.eup %2206 }
 0x129   :  { %v407_v43 = vadd.f32 1.0, %v2207_v48 }
 0x12b   :  { %2212 = vrcp.f32 %v407_v43 }
 0x12c   :  { %v2209_v24 = vpop.eup %2208  ;;  %2214 = vtanh.f32 %v394_v18 }
 0x12d   :  { %v409_v27 = vadd.f32 1.0, %v2209_v24  ;;  %v2211_v44 = vpop.eup %2210 }
 0x12f   :  { %2216 = vrcp.f32 %v409_v27 }
 0x130   :  { %2218 = vpow2.f32 %v1919_v36 }
 0x131   :  { %2220 = vpow2.f32 %v1921_v53 }
 0x135   :  { %v2213_v49 = vpop.eup %2212 }
 0x136   :  { %v431_v32 = vmul.f32 %v2213_v49, %v2211_v44  ;;  %v2215_v34 = vpop.eup %2214  ;;  %v429_v6 = vmul.f32 %v2213_v49, %v424_v57  ;;  %v302_v49 = vand.u32 127, %v50_v40 }
 0x138   :  { %435 = vrot.lane.b32.xlu0 %v431_v32, %s2424_s2  ;;  %vm447_vm2 = vcmp.lt.s32.totalorder %v302_v49, 32 }
 0x139   :  { %v2217_v46 = vpop.eup %2216 }
 0x13a   :  { %v432_v50 = vmul.f32 %v2217_v46, %v2215_v34  ;;  %v2219_v48 = vpop.eup %2218  ;;  %v430_v27 = vmul.f32 %v2217_v46, %v426_v12 }
 0x13b   :  { %v408_v61 = vadd.f32 1.0, %v2219_v48  ;;  %v2221_v1 = vpop.eup %2220 }
 0x13c   :  { %437 = vrot.lane.b32.xlu1 %v432_v50, %s2424_s2  ;;  %v410_v24 = vadd.f32 1.0, %v2221_v1 }
 0x13d   :  { %2222 = vrcp.f32 %v408_v61 }
 0x147   :  { %v2223_v47 = vpop.eup %2222 }
 0x1aa   :  { %v436_v42 = vpop.permute.xlu0 %435 }
 0x1ab   :  { %v441_v43 = vadd.f32 %v436_v42, %v429_v6 }
 0x1ad   :  { %2224 = vtanh.f32 %v441_v43 }
 0x1ae   :  { %v438_v44 = vpop.permute.xlu1 %437  ;;  %2226 = vrcp.f32 %v410_v24 }
 0x1af   :  { %v442_v32 = vadd.f32 %v438_v44, %v430_v27 }
 0x1b1   :  { %2228 = vtanh.f32 %v442_v32 }
 0x1b7   :  { %v2225_v34 = vpop.eup %2224 }
 0x1b8   :  { %v445_v18 = vmul.f32 %v2225_v34, %v2223_v47  ;;  %v2227_v50 = vpop.eup %2226 }
 0x1ba   :  { %460 = vrot.lane.b32.xlu0 %v445_v18, %s2424_s2 }
 0x1bb   :  { %v2229_v36 = vpop.eup %2228 }
 0x1bc   :  { %v446_v53 = vmul.f32 %v2229_v36, %v2227_v50 }
 0x1be   :  { %462 = vrot.lane.b32.xlu1 %v446_v53, %s2424_s2  ;;  %450 = vrot.lane.b32.xlu0 %v441_v43, %s2424_s2 }
 0x1c2   :  { %452 = vrot.lane.b32.xlu1 %v442_v32, %s2424_s2 }
 0x22c   :  { %v461_v46 = vpop.permute.xlu0 %460 }
 0x22d   :  { %v466_v48 = vsel %vm447_vm2, %v461_v46, %v2618_v38 }
 0x22e   :  { %1922 = vmatmul.mubr.msk.f32.vlgmr.msra.gmra.mrb[0].mxu1 %vm307_vm1, %v466_v48 }
 0x22f   :  { %548 = vmatprep.mubr.f32.mxu1 %v2423_v2  ;;  %2074 = vmatpush1.bf16.msra.mxu1 %v2496_v10 }
 0x230   :  { %v463_v57 = vpop.permute.xlu1 %462  ;;  %v451_v61 = vpop.permute.xlu0 %450  ;;  %2076 = vmatprep.subr.bf16.mxu1 %v2516_v15 }
 0x231   :  { %v467_v1 = vsel %vm447_vm2, %v463_v57, %v2626_v39  ;;  %v456_v40 = vsel %vm447_vm2, %v451_v61, %v2568_v30 }
 0x232   :  { %1923 = vmatmul.mubr.msk.f32.gmra.mrb[2].mxu1 %vm307_vm1, %v467_v1  ;;  %587 = vrot.lane.b32.xlu0 %v456_v40, %s2424_s2 }
 0x233   :  { %2078 = vmatpush1.bf16.msra.mxu1 %v2518_v16  ;;  %698 = vmatprep.mubr.f32.mxu1 %v2423_v2 }
 0x234   :  { %v453_v38 = vpop.permute.xlu1 %452  ;;  %2080 = vmatprep.subr.bf16.mxu1 %v2534_v21 }
 0x235   :  { %v457_v6 = vsel %vm447_vm2, %v453_v38, %v2573_v31 }
 0x236   :  { %589 = vrot.lane.b32.xlu0 %v457_v6, %s2424_s2 }
 0x237   :  { %2082 = vmatpush1.bf16.msra.mxu1 %v2541_v23 }
 0x238   :  { %2084 = vmatprep.subr.bf16.mxu1 %v2551_v26 }
 0x23b   :  { %2086 = vmatpush1.bf16.msra.mxu1 %v2563_v29 }
 0x23c   :  { %2088 = vmatprep.subr.bf16.mxu1 %v2488_v7 }
 0x2a4   :  { %v588_v57 = vpop.permute.xlu0 %587 }
 0x301   :  { %v544_v30 = vpop.f32.mrb[0].mxu1 }
 0x302   :  { %v555_v39 = vadd.f32 %v544_v30, %v2664_v52  ;;  %v546_v12 = vpop.f32.mrb[1].mxu1  ;;  %v590_v30 = vpop.permute.xlu0 %589 }
 0x303   :  { %v556_v42 = vadd.f32 %v546_v12, %v2667_v54 }
 0x304   :  { %v1924_v43 = vmul.f32 -1.442695, %v555_v39 }
 0x305   :  { %v550_v24 = vpop.f32.mrb[2].mxu1 }
 0x306   :  { %2230 = vpow2.f32 %v1924_v43  ;;  %v557_v31 = vadd.f32 %v550_v24, %v2670_v56  ;;  %v552_v27 = vpop.f32.mrb[3].mxu1 }
 0x307   :  { %v558_v44 = vadd.f32 %v552_v27, %v2673_v58  ;;  %v1925_v58 = vmul.f32 -1.442695, %v556_v42 }
 0x308   :  { %v1926_v32 = vmul.f32 -1.442695, %v557_v31 }
 0x309   :  { %v1927_v46 = vmul.f32 -1.442695, %v558_v44 }
 0x30a   :  { %2232 = vpow2.f32 %v1926_v32 }
 0x30b   :  { %2234 = vtanh.f32 %v556_v42 }
 0x310   :  { %v2231_v47 = vpop.eup %2230 }
 0x311   :  { %v571_v34 = vadd.f32 1.0, %v2231_v47 }
 0x313   :  { %2236 = vrcp.f32 %v571_v34 }
 0x314   :  { %v2233_v18 = vpop.eup %2232  ;;  %2238 = vtanh.f32 %v558_v44 }
 0x315   :  { %v573_v50 = vadd.f32 1.0, %v2233_v18  ;;  %v2235_v52 = vpop.eup %2234 }
 0x317   :  { %2240 = vrcp.f32 %v573_v50 }
 0x318   :  { %2242 = vpow2.f32 %v1925_v58 }
 0x319   :  { %2244 = vpow2.f32 %v1927_v46 }
 0x31d   :  { %v2237_v54 = vpop.eup %2236 }
 0x31e   :  { %v595_v36 = vmul.f32 %v2237_v54, %v2235_v52  ;;  %v2239_v53 = vpop.eup %2238  ;;  %v593_v40 = vmul.f32 %v2237_v54, %v588_v57 }
 0x320   :  { %599 = vrot.lane.b32.xlu1 %v595_v36, %s2424_s2 }
 0x321   :  { %v2241_v56 = vpop.eup %2240 }
 0x322   :  { %v596_v49 = vmul.f32 %v2241_v56, %v2239_v53  ;;  %v2243_v48 = vpop.eup %2242  ;;  %v594_v12 = vmul.f32 %v2241_v56, %v590_v30 }
 0x323   :  { %v572_v61 = vadd.f32 1.0, %v2243_v48  ;;  %v2245_v1 = vpop.eup %2244 }
 0x324   :  { %601 = vrot.lane.b32.xlu1 %v596_v49, %s2424_s2  ;;  %v574_v39 = vadd.f32 1.0, %v2245_v1 }
 0x325   :  { %2246 = vrcp.f32 %v572_v61 }
 0x32f   :  { %v2247_v42 = vpop.eup %2246 }
 0x392   :  { %v600_v38 = vpop.permute.xlu1 %599 }
 0x393   :  { %v2790_v6 = vadd.f32 %v600_v38, %v593_v40 }
 0x395   :  { %2248 = vtanh.f32 %v2790_v6 }
 0x396   :  { %v602_v43 = vpop.permute.xlu1 %601  ;;  %2250 = vrcp.f32 %v574_v39 }
 0x397   :  { %v2793_v24 = vadd.f32 %v602_v43, %v594_v12 }
 0x399   :  { %2252 = vtanh.f32 %v2793_v24 }
 0x39f   :  { %v2249_v31 = vpop.eup %2248 }
 0x3a0   :  { %v2796_v27 = vmul.f32 %v2249_v31, %v2247_v42  ;;  %v2251_v44 = vpop.eup %2250 }
 0x3a2   :  { %626 = vrot.lane.b32.xlu0 %v2796_v27, %s2424_s2 }
 0x3a3   :  { %v2253_v32 = vpop.eup %2252 }
 0x3a4   :  { %v2800_v47 = vmul.f32 %v2253_v32, %v2251_v44 }
 0x3a6   :  { %628 = vrot.lane.b32.xlu1 %v2800_v47, %s2424_s2 }
 0x414   :  { %v627_v34 = vpop.permute.xlu0 %626 }
 0x415   :  { %1928 = vmatmul.mubr.msk.f32.vlgmr.msra.gmra.mrb[4].mxu1 %vm307_vm1, %v627_v34 }
 0x416   :  { %704 = vmatprep.mubr.f32.mxu1 %v2423_v2  ;;  %2090 = vmatpush1.bf16.msra.mxu1 %v2496_v10 }
 0x417   :  { %2092 = vmatprep.subr.bf16.mxu1 %v2516_v15 }
 0x418   :  { %v629_v18 = vpop.permute.xlu1 %628 }
 0x419   :  { %1929 = vmatmul.mubr.msk.f32.gmra.mrb[6].mxu1 %vm307_vm1, %v629_v18 }
 0x41a   :  { %2094 = vmatpush1.bf16.msra.mxu1 %v2518_v16  ;;  %845 = vmatprep.mubr.f32.mxu1 %v2423_v2 }
 0x41b   :  { %2096 = vmatprep.subr.bf16.mxu1 %v2534_v21 }
 0x41e   :  { %2098 = vmatpush1.bf16.msra.mxu1 %v2541_v23 }
 0x41f   :  { %2100 = vmatprep.subr.bf16.mxu1 %v2551_v26 }
 0x422   :  { %2102 = vmatpush1.bf16.msra.mxu1 %v2563_v29 }
 0x423   :  { %2120 = vmatprep.subr.bf16.mxu1 %v2488_v7 }
 0x4e8   :  { %v700_v50 = vpop.f32.mrb[4].mxu1 }
 0x4e9   :  { %v711_v52 = vadd.f32 %v700_v50, %v2676_v60  ;;  %v702_v54 = vpop.f32.mrb[5].mxu1 }
 0x4ea   :  { %v712_v36 = vadd.f32 %v702_v54, %v2679_v62 }
 0x4eb   :  { %v1930_v53 = vmul.f32 -1.442695, %v711_v52 }
 0x4ec   :  { %v706_v56 = vpop.f32.mrb[6].mxu1 }
 0x4ed   :  { %2254 = vpow2.f32 %v1930_v53  ;;  %v713_v49 = vadd.f32 %v706_v56, %v2682_v0  ;;  %v708_v58 = vpop.f32.mrb[7].mxu1 }
 0x4ee   :  { %v714_v46 = vadd.f32 %v708_v58, %v2685_v3  ;;  %v1931_v3 = vmul.f32 -1.442695, %v712_v36 }
 0x4ef   :  { %v1932_v48 = vmul.f32 -1.442695, %v713_v49 }
 0x4f0   :  { %v1933_v12 = vmul.f32 -1.442695, %v714_v46 }
 0x4f1   :  { %2256 = vpow2.f32 %v1932_v48 }
 0x4f2   :  { %2258 = vtanh.f32 %v712_v36 }
 0x4f7   :  { %v2255_v57 = vpop.eup %2254 }
 0x4f8   :  { %v727_v61 = vadd.f32 1.0, %v2255_v57 }
 0x4fa   :  { %2260 = vrcp.f32 %v727_v61 }
 0x4fb   :  { %v2257_v1 = vpop.eup %2256  ;;  %2262 = vtanh.f32 %v714_v46 }
 0x4fc   :  { %v729_v40 = vadd.f32 1.0, %v2257_v1  ;;  %v2259_v60 = vpop.eup %2258 }
 0x4fe   :  { %2264 = vrcp.f32 %v729_v40 }
 0x4ff   :  { %2266 = vpow2.f32 %v1931_v3 }
 0x500   :  { %2268 = vpow2.f32 %v1933_v12 }
 0x504   :  { %v2261_v62 = vpop.eup %2260 }
 0x505   :  { %v743_v38 = vmul.f32 %v2261_v62, %v2259_v60  ;;  %v2263_v30 = vpop.eup %2262  ;;  %v741_v44 = vmul.f32 %v2261_v62, %v2790_v6 }
 0x507   :  { %747 = vrot.lane.b32.xlu0 %v743_v38, %s2424_s2 }
 0x508   :  { %v2265_v0 = vpop.eup %2264 }
 0x509   :  { %v744_v39 = vmul.f32 %v2265_v0, %v2263_v30  ;;  %v2267_v43 = vpop.eup %2266  ;;  %v742_v50 = vmul.f32 %v2265_v0, %v2793_v24 }
 0x50a   :  { %v728_v42 = vadd.f32 1.0, %v2267_v43  ;;  %v2269_v31 = vpop.eup %2268 }
 0x50b   :  { %749 = vrot.lane.b32.xlu1 %v744_v39, %s2424_s2  ;;  %v730_v18 = vadd.f32 1.0, %v2269_v31 }
 0x50c   :  { %2270 = vrcp.f32 %v728_v42 }
 0x516   :  { %v2271_v36 = vpop.eup %2270 }
 0x579   :  { %v748_v32 = vpop.permute.xlu0 %747 }
 0x57a   :  { %v2823_v34 = vadd.f32 %v748_v32, %v741_v44 }
 0x57c   :  { %2272 = vtanh.f32 %v2823_v34 }
 0x57d   :  { %v750_v52 = vpop.permute.xlu1 %749  ;;  %2274 = vrcp.f32 %v730_v18 }
 0x57e   :  { %v2827_v54 = vadd.f32 %v750_v52, %v742_v50 }
 0x580   :  { %2276 = vtanh.f32 %v2827_v54 }
 0x586   :  { %v2273_v53 = vpop.eup %2272 }
 0x587   :  { %v2830_v56 = vmul.f32 %v2273_v53, %v2271_v36  ;;  %v2275_v6 = vpop.eup %2274 }
 0x589   :  { %773 = vrot.lane.b32.xlu0 %v2830_v56, %s2424_s2 }
 0x58a   :  { %v2277_v49 = vpop.eup %2276 }
 0x58b   :  { %v2834_v58 = vmul.f32 %v2277_v49, %v2275_v6 }
 0x58d   :  { %775 = vrot.lane.b32.xlu1 %v2834_v58, %s2424_s2 }
 0x5fb   :  { %v774_v24 = vpop.permute.xlu0 %773 }
 0x5fc   :  { %1934 = vmatmul.mubr.msk.f32.vlgmr.msra.gmra.mrb[8].mxu1 %vm307_vm1, %v774_v24 }
 0x5fd   :  { %851 = vmatprep.mubr.f32.mxu1 %v2423_v2  ;;  %2122 = vmatpush1.bf16.msra.mxu1 %v2496_v10 }
 0x5fe   :  { %2124 = vmatprep.subr.bf16.mxu1 %v2516_v15 }
 0x5ff   :  { %v776_v46 = vpop.permute.xlu1 %775 }
 0x600   :  { %1935 = vmatmul.mubr.msk.f32.gmra.mrb[10].mxu1 %vm307_vm1, %v776_v46 }
 0x601   :  { %2126 = vmatpush1.bf16.msra.mxu1 %v2518_v16  ;;  %1139 = vmatprep.mubr.f32.mxu1 %v2423_v2 }
 0x602   :  { %2128 = vmatprep.subr.bf16.mxu1 %v2534_v21 }
 0x605   :  { %2130 = vmatpush1.bf16.msra.mxu1 %v2541_v23 }
 0x606   :  { %2132 = vmatprep.subr.bf16.mxu1 %v2551_v26 }
 0x609   :  { %2134 = vmatpush1.bf16.msra.mxu1 %v2563_v29 }
 0x60a   :  { %2152 = vmatprep.subr.bf16.mxu1 %v2488_v7 }
 0x6cf   :  { %v847_v48 = vpop.f32.mrb[8].mxu1 }
 0x6d0   :  { %v858_v57 = vadd.f32 %v847_v48, %v2688_v5  ;;  %v849_v61 = vpop.f32.mrb[9].mxu1 }
 0x6d1   :  { %v859_v1 = vadd.f32 %v849_v61, %v2691_v8 }
 0x6d2   :  { %v1936_v40 = vmul.f32 -1.442695, %v858_v57 }
 0x6d3   :  { %v853_v60 = vpop.f32.mrb[10].mxu1 }
 0x6d4   :  { %2278 = vpow2.f32 %v1936_v40  ;;  %v860_v62 = vadd.f32 %v853_v60, %v2694_v11  ;;  %v855_v38 = vpop.f32.mrb[11].mxu1 }
 0x6d5   :  { %v861_v30 = vadd.f32 %v855_v38, %v2697_v13  ;;  %v1937_v13 = vmul.f32 -1.442695, %v859_v1 }
 0x6d6   :  { %v1938_v0 = vmul.f32 -1.442695, %v860_v62 }
 0x6d7   :  { %v1939_v32 = vmul.f32 -1.442695, %v861_v30 }
 0x6d8   :  { %2280 = vpow2.f32 %v1938_v0 }
 0x6d9   :  { %2282 = vtanh.f32 %v859_v1 }
 0x6de   :  { %v2279_v39 = vpop.eup %2278 }
 0x6df   :  { %v874_v3 = vadd.f32 1.0, %v2279_v39 }
 0x6e1   :  { %2284 = vrcp.f32 %v874_v3 }
 0x6e2   :  { %v2281_v12 = vpop.eup %2280  ;;  %2286 = vtanh.f32 %v861_v30 }
 0x6e3   :  { %v876_v43 = vadd.f32 1.0, %v2281_v12  ;;  %v2283_v5 = vpop.eup %2282 }
 0x6e5   :  { %2288 = vrcp.f32 %v876_v43 }
 0x6e6   :  { %2290 = vpow2.f32 %v1937_v13 }
 0x6e7   :  { %2292 = vpow2.f32 %v1939_v32 }
 0x6eb   :  { %v2285_v8 = vpop.eup %2284 }
 0x6ec   :  { %v890_v42 = vmul.f32 %v2285_v8, %v2283_v5  ;;  %v2287_v31 = vpop.eup %2286  ;;  %v888_v36 = vmul.f32 %v2285_v8, %v2823_v34 }
 0x6ee   :  { %894 = vrot.lane.b32.xlu0 %v890_v42, %s2424_s2 }
 0x6ef   :  { %v2289_v11 = vpop.eup %2288 }
 0x6f0   :  { %v891_v44 = vmul.f32 %v2289_v11, %v2287_v31  ;;  %v2291_v18 = vpop.eup %2290  ;;  %v889_v24 = vmul.f32 %v2289_v11, %v2827_v54 }
 0x6f1   :  { %v875_v50 = vadd.f32 1.0, %v2291_v18  ;;  %v2293_v52 = vpop.eup %2292 }
 0x6f2   :  { %896 = vrot.lane.b32.xlu1 %v891_v44, %s2424_s2  ;;  %v877_v49 = vadd.f32 1.0, %v2293_v52 }
 0x6f3   :  { %2294 = vrcp.f32 %v875_v50 }
 0x6fd   :  { %v2295_v57 = vpop.eup %2294 }
 0x760   :  { %v895_v53 = vpop.permute.xlu0 %894 }
 0x761   :  { %v2857_v6 = vadd.f32 %v895_v53, %v888_v36 }
 0x763   :  { %2296 = vtanh.f32 %v2857_v6 }
 0x764   :  { %v897_v46 = vpop.permute.xlu1 %896  ;;  %2298 = vrcp.f32 %v877_v49 }
 0x765   :  { %v2861_v48 = vadd.f32 %v897_v46, %v889_v24 }
 0x767   :  { %2300 = vtanh.f32 %v2861_v48 }
 0x76d   :  { %v2297_v61 = vpop.eup %2296 }
 0x76e   :  { %v2864_v1 = vmul.f32 %v2297_v61, %v2295_v57  ;;  %v2299_v34 = vpop.eup %2298 }
 0x770   :  { %920 = vrot.lane.b32.xlu0 %v2864_v1, %s2424_s2 }
 0x771   :  { %v2301_v40 = vpop.eup %2300 }
 0x772   :  { %v2868_v60 = vmul.f32 %v2301_v40, %v2299_v34 }
 0x774   :  { %922 = vrot.lane.b32.xlu1 %v2868_v60, %s2424_s2 }
 0x7e2   :  { %v921_v54 = vpop.permute.xlu0 %920 }
 0x7e3   :  { %1940 = vmatmul.mubr.msk.f32.vlgmr.msra.gmra.mrb[36].mxu0 %vm307_vm1, %v921_v54 }
 0x7e4   :  { %998 = vmatprep.mubr.f32.mxu0 %v2423_v2  ;;  %2138 = vmatpush1.bf16.msra.mxu0 %v2496_v10 }
 0x7e5   :  { %2140 = vmatprep.subr.bf16.mxu0 %v2516_v15 }
 0x7e6   :  { %v923_v62 = vpop.permute.xlu1 %922 }
 0x7e7   :  { %1941 = vmatmul.mubr.msk.f32.gmra.mrb[38].mxu0 %vm307_vm1, %v923_v62 }
 0x7e8   :  { %2142 = vmatpush1.bf16.msra.mxu0 %v2518_v16  ;;  %1286 = vmatprep.mubr.f32.mxu0 %v2423_v2 }
 0x7e9   :  { %2144 = vmatprep.subr.bf16.mxu0 %v2534_v21 }
 0x7ec   :  { %2146 = vmatpush1.bf16.msra.mxu0 %v2541_v23 }
 0x7ed   :  { %2148 = vmatprep.subr.bf16.mxu0 %v2551_v26 }
 0x7f0   :  { %2150 = vmatpush1.bf16.msra.mxu0 %v2563_v29 }
 0x7f1   :  { %2168 = vmatprep.subr.bf16.mxu0 %v2488_v7 }
 0x8b6   :  { %v994_v38 = vpop.f32.mrb[36].mxu0 }
 0x8b7   :  { %v1005_v30 = vadd.f32 %v994_v38, %v2700_v17  ;;  %v996_v0 = vpop.f32.mrb[37].mxu0 }
 0x8b8   :  { %v1006_v39 = vadd.f32 %v996_v0, %v2703_v19 }
 0x8b9   :  { %v1942_v3 = vmul.f32 -1.442695, %v1005_v30 }
 0x8ba   :  { %v1000_v12 = vpop.f32.mrb[38].mxu0 }
 0x8bb   :  { %2302 = vpow2.f32 %v1942_v3  ;;  %v1007_v43 = vadd.f32 %v1000_v12, %v2706_v22  ;;  %v1002_v5 = vpop.f32.mrb[39].mxu0 }
 0x8bc   :  { %v1008_v8 = vadd.f32 %v1002_v5, %v2709_v25  ;;  %v1943_v25 = vmul.f32 -1.442695, %v1006_v39 }
 0x8bd   :  { %v1944_v42 = vmul.f32 -1.442695, %v1007_v43 }
 0x8be   :  { %v1945_v50 = vmul.f32 -1.442695, %v1008_v8 }
 0x8bf   :  { %2304 = vpow2.f32 %v1944_v42 }
 0x8c0   :  { %2306 = vtanh.f32 %v1006_v39 }
 0x8c5   :  { %v2303_v31 = vpop.eup %2302 }
 0x8c6   :  { %v1021_v11 = vadd.f32 1.0, %v2303_v31 }
 0x8c8   :  { %2308 = vrcp.f32 %v1021_v11 }
 0x8c9   :  { %v2305_v7 = vpop.eup %2304  ;;  %2310 = vtanh.f32 %v1008_v8 }
 0x8ca   :  { %v1023_v44 = vadd.f32 1.0, %v2305_v7  ;;  %v2307_v17 = vpop.eup %2306 }
 0x8cc   :  { %2312 = vrcp.f32 %v1023_v44 }
 0x8cd   :  { %2314 = vpow2.f32 %v1943_v25 }
 0x8ce   :  { %2316 = vpow2.f32 %v1945_v50 }
 0x8d2   :  { %v2309_v19 = vpop.eup %2308 }
 0x8d3   :  { %v1037_v13 = vmul.f32 %v2309_v19, %v2307_v17  ;;  %v2311_v32 = vpop.eup %2310  ;;  %v1035_v49 = vmul.f32 %v2309_v19, %v2857_v6 }
 0x8d5   :  { %1041 = vrot.lane.b32.xlu0 %v1037_v13, %s2424_s2 }
 0x8d6   :  { %v2313_v22 = vpop.eup %2312 }
 0x8d7   :  { %v1038_v18 = vmul.f32 %v2313_v22, %v2311_v32  ;;  %v2315_v52 = vpop.eup %2314  ;;  %v1036_v61 = vmul.f32 %v2313_v22, %v2861_v48 }
 0x8d8   :  { %v1022_v36 = vadd.f32 1.0, %v2315_v52  ;;  %v2317_v53 = vpop.eup %2316 }
 0x8d9   :  { %1043 = vrot.lane.b32.xlu1 %v1038_v18, %s2424_s2  ;;  %v1024_v57 = vadd.f32 1.0, %v2317_v53 }
 0x8da   :  { %2318 = vrcp.f32 %v1022_v36 }
 0x8e4   :  { %v2319_v54 = vpop.eup %2318 }
 0x947   :  { %v1042_v24 = vpop.permute.xlu0 %1041 }
 0x948   :  { %v2891_v46 = vadd.f32 %v1042_v24, %v1035_v49 }
 0x94a   :  { %2320 = vtanh.f32 %v2891_v46 }
 0x94b   :  { %v1044_v34 = vpop.permute.xlu1 %1043  ;;  %2322 = vrcp.f32 %v1024_v57 }
 0x94c   :  { %v2895_v40 = vadd.f32 %v1044_v34, %v1036_v61 }
 0x94e   :  { %2324 = vtanh.f32 %v2895_v40 }
 0x954   :  { %v2321_v62 = vpop.eup %2320 }
 0x955   :  { %v2898_v38 = vmul.f32 %v2321_v62, %v2319_v54  ;;  %v2323_v6 = vpop.eup %2322 }
 0x957   :  { %1067 = vrot.lane.b32.xlu0 %v2898_v38, %s2424_s2 }
 0x958   :  { %v2325_v30 = vpop.eup %2324 }
 0x959   :  { %v2902_v0 = vmul.f32 %v2325_v30, %v2323_v6 }
 0x95b   :  { %1069 = vrot.lane.b32.xlu1 %v2902_v0, %s2424_s2 }
 0x9c9   :  { %v1068_v48 = vpop.permute.xlu0 %1067 }
 0x9ca   :  { %1946 = vmatmul.mubr.msk.f32.vlgmr.msra.gmra.mrb[12].mxu1 %vm307_vm1, %v1068_v48 }
 0x9cb   :  { %1145 = vmatprep.mubr.f32.mxu1 %v2423_v2  ;;  %2154 = vmatpush1.bf16.msra.mxu1 %v2496_v10 }
 0x9cc   :  { %2156 = vmatprep.subr.bf16.mxu1 %v2516_v15 }
 0x9cd   :  { %v1070_v39 = vpop.permute.xlu1 %1069 }
 0x9ce   :  { %1947 = vmatmul.mubr.msk.f32.gmra.mrb[14].mxu1 %vm307_vm1, %v1070_v39 }
 0x9cf   :  { %2158 = vmatpush1.bf16.msra.mxu1 %v2518_v16  ;;  %1433 = vmatprep.mubr.f32.mxu1 %v2423_v2 }
 0x9d0   :  { %2160 = vmatprep.subr.bf16.mxu1 %v2534_v21 }
 0x9d3   :  { %2162 = vmatpush1.bf16.msra.mxu1 %v2541_v23 }
 0x9d4   :  { %2164 = vmatprep.subr.bf16.mxu1 %v2551_v26 }
 0x9d7   :  { %2166 = vmatpush1.bf16.msra.mxu1 %v2563_v29 }
 0xa9d   :  { %v1141_v3 = vpop.f32.mrb[12].mxu1 }
 0xa9e   :  { %v1152_v12 = vadd.f32 %v1141_v3, %v2712_v28  ;;  %v1143_v43 = vpop.f32.mrb[13].mxu1 }
 0xa9f   :  { %v1153_v5 = vadd.f32 %v1143_v43, %v2715_v33 }
 0xaa0   :  { %v1948_v8 = vmul.f32 -1.442695, %v1152_v12 }
 0xaa1   :  { %v1147_v42 = vpop.f32.mrb[14].mxu1 }
 0xaa2   :  { %2326 = vpow2.f32 %v1948_v8  ;;  %v1154_v31 = vadd.f32 %v1147_v42, %v2718_v35  ;;  %v1149_v11 = vpop.f32.mrb[15].mxu1 }
 0xaa3   :  { %v1155_v7 = vadd.f32 %v1149_v11, %v2721_v37  ;;  %v1949_v37 = vmul.f32 -1.442695, %v1153_v5 }
 0xaa4   :  { %v1950_v44 = vmul.f32 -1.442695, %v1154_v31 }
 0xaa5   :  { %v1951_v50 = vmul.f32 -1.442695, %v1155_v7 }
 0xaa6   :  { %2328 = vpow2.f32 %v1950_v44 }
 0xaa7   :  { %2330 = vtanh.f32 %v1153_v5 }
 0xaac   :  { %v2327_v17 = vpop.eup %2326 }
 0xaad   :  { %v1168_v19 = vadd.f32 1.0, %v2327_v17 }
 0xaaf   :  { %2332 = vrcp.f32 %v1168_v19 }
 0xab0   :  { %v2329_v13 = vpop.eup %2328  ;;  %2334 = vtanh.f32 %v1155_v7 }
 0xab1   :  { %v1170_v32 = vadd.f32 1.0, %v2329_v13  ;;  %v2331_v28 = vpop.eup %2330 }
 0xab3   :  { %2336 = vrcp.f32 %v1170_v32 }
 0xab4   :  { %2338 = vpow2.f32 %v1949_v37 }
 0xab5   :  { %2340 = vpow2.f32 %v1951_v50 }
 0xab9   :  { %v2333_v33 = vpop.eup %2332 }
 0xaba   :  { %v1184_v22 = vmul.f32 %v2333_v33, %v2331_v28  ;;  %v2335_v18 = vpop.eup %2334  ;;  %v1182_v49 = vmul.f32 %v2333_v33, %v2891_v46 }
 0xabc   :  { %1188 = vrot.lane.b32.xlu0 %v1184_v22, %s2424_s2 }
 0xabd   :  { %v2337_v35 = vpop.eup %2336 }
 0xabe   :  { %v1185_v25 = vmul.f32 %v2337_v35, %v2335_v18  ;;  %v2339_v52 = vpop.eup %2338  ;;  %v1183_v34 = vmul.f32 %v2337_v35, %v2895_v40 }
 0xabf   :  { %v1169_v36 = vadd.f32 1.0, %v2339_v52  ;;  %v2341_v53 = vpop.eup %2340 }
 0xac0   :  { %1190 = vrot.lane.b32.xlu1 %v1185_v25, %s2424_s2  ;;  %v1171_v61 = vadd.f32 1.0, %v2341_v53 }
 0xac1   :  { %2342 = vrcp.f32 %v1169_v36 }
 0xacb   :  { %v2343_v6 = vpop.eup %2342 }
 0xb2e   :  { %v1189_v24 = vpop.permute.xlu0 %1188 }
 0xb2f   :  { %v2924_v57 = vadd.f32 %v1189_v24, %v1182_v49 }
 0xb31   :  { %2344 = vtanh.f32 %v2924_v57 }
 0xb32   :  { %v1191_v54 = vpop.permute.xlu1 %1190  ;;  %2346 = vrcp.f32 %v1171_v61 }
 0xb33   :  { %v2928_v62 = vadd.f32 %v1191_v54, %v1183_v34 }
 0xb35   :  { %2348 = vtanh.f32 %v2928_v62 }
 0xb3b   :  { %v2345_v30 = vpop.eup %2344 }
 0xb3c   :  { %v2931_v48 = vmul.f32 %v2345_v30, %v2343_v6  ;;  %v2347_v46 = vpop.eup %2346 }
 0xb3e   :  { %1214 = vrot.lane.b32.xlu0 %v2931_v48, %s2424_s2 }
 0xb3f   :  { %v2349_v39 = vpop.eup %2348 }
 0xb40   :  { %v2935_v3 = vmul.f32 %v2349_v39, %v2347_v46 }
 0xb42   :  { %1216 = vrot.lane.b32.xlu1 %v2935_v3, %s2424_s2 }
 0xbb0   :  { %v1215_v40 = vpop.permute.xlu0 %1214 }
 0xbb1   :  { %1952 = vmatmul.mubr.msk.f32.vlgmr.msra.gmra.mrb[40].mxu0 %vm307_vm1, %v1215_v40 }
 0xbb2   :  { %1292 = vmatprep.mubr.f32.mxu0 %v2423_v2  ;;  %2170 = vmatpush1.bf16.msra.mxu0 %v2496_v10 }
 0xbb3   :  { %2172 = vmatprep.subr.bf16.mxu0 %v2516_v15 }
 0xbb4   :  { %v1217_v12 = vpop.permute.xlu1 %1216 }
 0xbb5   :  { %1953 = vmatmul.mubr.msk.f32.gmra.mrb[42].mxu0 %vm307_vm1, %v1217_v12 }
 0xbb6   :  { %2174 = vmatpush1.bf16.msra.mxu0 %v2518_v16  ;;  %1576 = vmatprep.mubr.f32.mxu0 %v2423_v2 }
 0xbb7   :  { %2176 = vmatprep.subr.bf16.mxu0 %v2534_v21 }
 0xbba   :  { %2178 = vmatpush1.bf16.msra.mxu0 %v2541_v23 }
 0xbbb   :  { %2180 = vmatprep.subr.bf16.mxu0 %v2551_v26 }
 0xbbe   :  { %2182 = vmatpush1.bf16.msra.mxu0 %v2563_v29 }
 0xc84   :  { %v1288_v43 = vpop.f32.mrb[40].mxu0 }
 0xc85   :  { %v1299_v10 = vadd.f32 %v1288_v43, %v2724_v51  ;;  %v1290_v5 = vpop.f32.mrb[41].mxu0 }
 0xc86   :  { %v1300_v15 = vadd.f32 %v1290_v5, %v2727_v55 }
 0xc87   :  { %v1954_v8 = vmul.f32 -1.442695, %v1299_v10 }
 0xc88   :  { %v1294_v42 = vpop.f32.mrb[42].mxu0 }
 0xc89   :  { %2350 = vpow2.f32 %v1954_v8  ;;  %v1301_v16 = vadd.f32 %v1294_v42, %v2730_v59  ;;  %v1296_v31 = vpop.f32.mrb[43].mxu0 }
 0xc8a   :  { %v1302_v21 = vadd.f32 %v1296_v31, %v2733_v63  ;;  %v1955_v63 = vmul.f32 -1.442695, %v1300_v15 }
 0xc8b   :  { %v1956_v11 = vmul.f32 -1.442695, %v1301_v16 }
 0xc8c   :  { %v1957_v13 = vmul.f32 -1.442695, %v1302_v21 }
 0xc8d   :  { %2352 = vpow2.f32 %v1956_v11 }
 0xc8e   :  { %2354 = vtanh.f32 %v1300_v15 }
 0xc93   :  { %v2351_v23 = vpop.eup %2350 }
 0xc94   :  { %v1315_v26 = vadd.f32 1.0, %v2351_v23 }
 0xc96   :  { %2356 = vrcp.f32 %v1315_v26 }
 0xc97   :  { %v2353_v29 = vpop.eup %2352  ;;  %2358 = vtanh.f32 %v1302_v21 }
 0xc98   :  { %v1317_v7 = vadd.f32 1.0, %v2353_v29  ;;  %v2355_v51 = vpop.eup %2354 }
 0xc9a   :  { %2360 = vrcp.f32 %v1317_v7 }
 0xc9b   :  { %2362 = vpow2.f32 %v1955_v63 }
 0xc9c   :  { %2364 = vpow2.f32 %v1957_v13 }
 0xca0   :  { %v2357_v55 = vpop.eup %2356 }
 0xca1   :  { %v1331_v44 = vmul.f32 %v2357_v55, %v2355_v51  ;;  %v2359_v17 = vpop.eup %2358  ;;  %v1329_v22 = vmul.f32 %v2357_v55, %v2924_v57 }
 0xca3   :  { %1335 = vrot.lane.b32.xlu0 %v1331_v44, %s2424_s2 }
 0xca4   :  { %v2361_v59 = vpop.eup %2360 }
 0xca5   :  { %v1332_v19 = vmul.f32 %v2361_v59, %v2359_v17  ;;  %v2363_v32 = vpop.eup %2362  ;;  %v1330_v37 = vmul.f32 %v2361_v59, %v2928_v62 }
 0xca6   :  { %v1316_v28 = vadd.f32 1.0, %v2363_v32  ;;  %v2365_v33 = vpop.eup %2364 }
 0xca7   :  { %1337 = vrot.lane.b32.xlu1 %v1332_v19, %s2424_s2  ;;  %v1318_v25 = vadd.f32 1.0, %v2365_v33 }
 0xca8   :  { %2366 = vrcp.f32 %v1316_v28 }
 0xcb2   :  { %v2367_v36 = vpop.eup %2366 }
 0xd15   :  { %v1336_v18 = vpop.permute.xlu0 %1335 }
 0xd16   :  { %v1341_v35 = vadd.f32 %v1336_v18, %v1329_v22 }
 0xd18   :  { %2368 = vtanh.f32 %v1341_v35 }
 0xd19   :  { %v1338_v50 = vpop.permute.xlu1 %1337  ;;  %2370 = vrcp.f32 %v1318_v25 }
 0xd1a   :  { %v1342_v52 = vadd.f32 %v1338_v50, %v1330_v37  ;;  %v296_v37 = vld [vmem:[%s3129_s3] sm:$0x3] }
 0xd1b   :  { %v1593_v50 = vrot.slane %v296_v37, %v52_v45 }
 0xd1c   :  { %2372 = vtanh.f32 %v1342_v52 }
 0xd22   :  { %v2369_v53 = vpop.eup %2368 }
 0xd23   :  { %v2958_v49 = vmul.f32 %v2369_v53, %v2367_v36  ;;  %v2371_v24 = vpop.eup %2370 }
 0xd25   :  { %1361 = vrot.lane.b32.xlu0 %v2958_v49, %s2424_s2 }
 0xd26   :  { %v2373_v57 = vpop.eup %2372 }
 0xd27   :  { %v2962_v61 = vmul.f32 %v2373_v57, %v2371_v24 }
 0xd29   :  { %1363 = vrot.lane.b32.xlu1 %v2962_v61, %s2424_s2 }
 0xd97   :  { %v1362_v34 = vpop.permute.xlu0 %1361 }
 0xd98   :  { %1958 = vmatmul.mubr.msk.f32.vlgmr.msra.gmra.mrb[16].mxu1 %vm307_vm1, %v1362_v34 }
 0xd99   :  { %1439 = vmatprep.mubr.f32.mxu1 %v2423_v2 }
 0xd9b   :  { %v1364_v54 = vpop.permute.xlu1 %1363 }
 0xd9c   :  { %1959 = vmatmul.mubr.msk.f32.gmra.mrb[18].mxu1 %vm307_vm1, %v1364_v54 }
 0xe6b   :  { %v1435_v62 = vpop.f32.mrb[16].mxu1 }
 0xe6c   :  { %v1446_v6 = vadd.f32 %v1435_v62, %v2736_v4  ;;  %v1437_v30 = vpop.f32.mrb[17].mxu1 }
 0xe6d   :  { %v1447_v46 = vadd.f32 %v1437_v30, %v2739_v9 }
 0xe6e   :  { %v1960_v39 = vmul.f32 -1.442695, %v1446_v6 }
 0xe6f   :  { %v1441_v40 = vpop.f32.mrb[18].mxu1 }
 0xe70   :  { %2374 = vpow2.f32 %v1960_v39  ;;  %v1448_v12 = vadd.f32 %v1441_v40, %v2742_v14  ;;  %v1443_v43 = vpop.f32.mrb[19].mxu1 }
 0xe71   :  { %v1449_v10 = vadd.f32 %v1443_v43, %v2745_v20  ;;  %v1961_v20 = vmul.f32 -1.442695, %v1447_v46  ;;  %v1674_v43 = vld [vmem:[%s3130_s4] sm:$0xff] }
 0xe72   :  { %v1962_v5 = vmul.f32 -1.442695, %v1448_v12 }
 0xe73   :  { %v1963_v23 = vmul.f32 -1.442695, %v1449_v10 }
 0xe74   :  { %2376 = vpow2.f32 %v1962_v5 }
 0xe75   :  { %2378 = vtanh.f32 %v1447_v46 }
 0xe7a   :  { %v2375_v15 = vpop.eup %2374 }
 0xe7b   :  { %v1462_v8 = vadd.f32 1.0, %v2375_v15  ;;  %v1676_v15 = vld [vmem:[%s3130_s4 + $0x10] sm:$0xff] }
 0xe7d   :  { %2380 = vrcp.f32 %v1462_v8  ;;  %v1677_v8 = vld [vmem:[%s3130_s4 + $0x18] sm:$0xff] }
 0xe7e   :  { %v2377_v42 = vpop.eup %2376  ;;  %2382 = vtanh.f32 %v1449_v10 }
 0xe7f   :  { %v1464_v16 = vadd.f32 1.0, %v2377_v42  ;;  %v2379_v4 = vpop.eup %2378 }
 0xe81   :  { %2384 = vrcp.f32 %v1464_v16  ;;  %v2187_v16 = vpack.c.bf16 %v1677_v8, %v1676_v15 }
 0xe82   :  { %2386 = vpow2.f32 %v1961_v20 }
 0xe83   :  { %2388 = vpow2.f32 %v1963_v23 }
 0xe87   :  { %v2381_v9 = vpop.eup %2380 }
 0xe88   :  { %v1478_v31 = vmul.f32 %v2381_v9, %v2379_v4  ;;  %v2383_v21 = vpop.eup %2382  ;;  %v1476_v51 = vmul.f32 %v2381_v9, %v1341_v35 }
 0xe8a   :  { %1482 = vrot.lane.b32.xlu0 %v1478_v31, %s2424_s2 }
 0xe8b   :  { %v2385_v14 = vpop.eup %2384 }
 0xe8c   :  { %v1479_v11 = vmul.f32 %v2385_v14, %v2383_v21  ;;  %v2387_v26 = vpop.eup %2386  ;;  %v1477_v59 = vmul.f32 %v2385_v14, %v1342_v52 }
 0xe8d   :  { %v1463_v29 = vadd.f32 1.0, %v2387_v26  ;;  %v2389_v7 = vpop.eup %2388 }
 0xe8e   :  { %1484 = vrot.lane.b32.xlu1 %v1479_v11, %s2424_s2  ;;  %v1465_v17 = vadd.f32 1.0, %v2389_v7 }
 0xe8f   :  { %2390 = vrcp.f32 %v1463_v29 }
 0xe99   :  { %v2391_v13 = vpop.eup %2390 }
 0xefc   :  { %v1483_v55 = vpop.permute.xlu0 %1482 }
 0xefd   :  { %v2975_v44 = vadd.f32 %v1483_v55, %v1476_v51 }
 0xeff   :  { %2392 = vtanh.f32 %v2975_v44 }
 0xf00   :  { %v1485_v19 = vpop.permute.xlu1 %1484  ;;  %2394 = vrcp.f32 %v1465_v17 }
 0xf01   :  { %v2978_v63 = vadd.f32 %v1485_v19, %v1477_v59 }
 0xf03   :  { %2396 = vtanh.f32 %v2978_v63 }
 0xf09   :  { %v2393_v32 = vpop.eup %2392 }
 0xf0a   :  { %v2981_v28 = vmul.f32 %v2393_v32, %v2391_v13  ;;  %v2395_v33 = vpop.eup %2394 }
 0xf0c   :  { %1504 = vrot.lane.b32.xlu0 %v2981_v28, %s2424_s2 }
 0xf0d   :  { %v2397_v22 = vpop.eup %2396 }
 0xf0e   :  { %v1493_v18 = vmul.f32 %v2397_v22, %v2395_v33 }
 0xf10   :  { %1506 = vrot.lane.b32.xlu1 %v1493_v18, %s2424_s2 }
 0xf7e   :  { %v1505_v35 = vpop.permute.xlu0 %1504 }
 0xf7f   :  { %1964 = vmatmul.mubr.msk.f32.vlgmr.msra.gmra.mrb[44].mxu0 %vm307_vm1, %v1505_v35 }
 0xf80   :  { %1582 = vmatprep.mubr.f32.mxu0 %v2423_v2  ;;  %v3134_v2 = vsub.s32 1, %v2640_v41  ;;  %v1675_v41 = vld [vmem:[%s3130_s4 + $0x8] sm:$0xff] }
 0xf81   :  { %v2183_v10 = vpack.c.bf16 %v1675_v41, %v1674_v43 }
 0xf82   :  { %v1507_v25 = vpop.permute.xlu1 %1506  ;;  %v1597_v6 = vrot.slane %v296_v37, %v3134_v2 }
 0xf83   :  { %1965 = vmatmul.mubr.msk.f32.gmra.mrb[46].mxu0 %vm307_vm1, %v1507_v25  ;;  %2184 = vmatprep.subr.bf16.mxu1 %v2183_v10 }
 0xf84   :  { %2186 = vmatpush3.bf16.msra.mxu1 %v2183_v10 }
 0xf85   :  { %2188 = vmatprep.subr.bf16.mxu1 %v2187_v16 }
 0xf88   :  { %2190 = vmatpush3.bf16.msra.mxu1 %v2187_v16 }
0x1052   :  { %v1578_v52 = vpop.f32.mrb[44].mxu0 }
0x1053   :  { %v1600_v36 = vadd.f32 %v1593_v50, %v1578_v52  ;;  %v1580_v53 = vpop.f32.mrb[45].mxu0 }
0x1054   :  { %v1601_v30 = vadd.f32 %v1597_v6, %v1580_v53 }
0x1055   :  { %v1966_v24 = vmul.f32 -1.442695, %v1600_v36 }
0x1056   :  { %v1584_v57 = vpop.f32.mrb[46].mxu0 }
0x1057   :  { %2398 = vpow2.f32 %v1966_v24  ;;  %v1602_v34 = vadd.f32 %v1593_v50, %v1584_v57  ;;  %v1586_v54 = vpop.f32.mrb[47].mxu0 }
0x1058   :  { %v1603_v40 = vadd.f32 %v1597_v6, %v1586_v54 }
0x1059   :  { %v1968_v62 = vmul.f32 -1.442695, %v1602_v34 }
0x105b   :  { %2400 = vpow2.f32 %v1968_v62 }
0x105c   :  { %2402 = vtanh.f32 %v1601_v30 }
0x1061   :  { %v2399_v46 = vpop.eup %2398 }
0x1062   :  { %v1616_v39 = vadd.f32 1.0, %v2399_v46 }
0x1064   :  { %2404 = vrcp.f32 %v1616_v39 }
0x1065   :  { %v2401_v45 = vpop.eup %2400  ;;  %2406 = vtanh.f32 %v1603_v40 }
0x1066   :  { %v1618_v12 = vadd.f32 1.0, %v2401_v45  ;;  %v2403_v5 = vpop.eup %2402  ;;  %v1970_v45 = vld [vmem:[%s3131_s5] ss:$0 sm:$0xff] }
0x1068   :  { %2408 = vrcp.f32 %v1618_v12 }
0x106e   :  { %v2405_v42 = vpop.eup %2404 }
0x106f   :  { %v1632_v4 = vmul.f32 %v2405_v42, %v2403_v5  ;;  %v2407_v9 = vpop.eup %2406 }
0x1071   :  { %1636 = vrot.lane.b32.xlu0 %v1632_v4, %s2424_s2 }
0x1072   :  { %v2409_v31 = vpop.eup %2408 }
0x1073   :  { %v1633_v21 = vmul.f32 %v2409_v31, %v2407_v9 }
0x1075   :  { %613 = vrot.lane.b32.xlu0 %v2796_v27, %s2425_s26  ;;  %1638 = vrot.lane.b32.xlu1 %v1633_v21, %s2424_s2  ;;  %v1967_v27 = vmul.f32 -1.442695, %v1601_v30 }
0x1077   :  { %2410 = vpow2.f32 %v1967_v27 }
0x1079   :  { %761 = vrot.lane.b32.xlu0 %v2830_v56, %s2425_s26  ;;  %615 = vrot.lane.b32.xlu1 %v2800_v47, %s2425_s26  ;;  %v1969_v47 = vmul.f32 -1.442695, %v1603_v40 }
0x107b   :  { %2412 = vpow2.f32 %v1969_v47 }
0x107d   :  { %908 = vrot.lane.b32.xlu0 %v2864_v1, %s2425_s26  ;;  %763 = vrot.lane.b32.xlu1 %v2834_v58, %s2425_s26 }
0x1081   :  { %1055 = vrot.lane.b32.xlu0 %v2898_v38, %s2425_s26  ;;  %910 = vrot.lane.b32.xlu1 %v2868_v60, %s2425_s26  ;;  %v2411_v56 = vpop.eup %2410  ;;  %v1630_v60 = vmul.f32 %v2405_v42, %v2975_v44 }
0x1082   :  { %v1617_v58 = vadd.f32 1.0, %v2411_v56 }
0x1084   :  { %2414 = vrcp.f32 %v1617_v58 }
0x1085   :  { %1202 = vrot.lane.b32.xlu0 %v2931_v48, %s2425_s26  ;;  %1057 = vrot.lane.b32.xlu1 %v2902_v0, %s2425_s26  ;;  %v2413_v1 = vpop.eup %2412 }
0x1086   :  { %v1619_v48 = vadd.f32 1.0, %v2413_v1 }
0x1089   :  { %1349 = vrot.lane.b32.xlu0 %v2958_v49, %s2425_s26  ;;  %1204 = vrot.lane.b32.xlu1 %v2935_v3, %s2425_s26  ;;  %v1631_v3 = vmul.f32 %v2409_v31, %v2978_v63 }
0x108d   :  { %1496 = vrot.lane.b32.xlu0 %v2981_v28, %s2425_s26  ;;  %1351 = vrot.lane.b32.xlu1 %v2962_v61, %s2425_s26 }
0x108e   :  { %v2415_v23 = vpop.eup %2414 }
0x1091   :  { %1498 = vrot.lane.b32.xlu1 %v1493_v18, %s2425_s26 }
0x10e3   :  { %v1637_v38 = vpop.permute.xlu0 %1636 }
0x10e4   :  { %v1642_v0 = vadd.f32 %v1637_v38, %v1630_v60 }
0x10e6   :  { %2416 = vtanh.f32 %v1642_v0 }
0x10e7   :  { %v614_v49 = vpop.permute.xlu0 %613  ;;  %v1639_v61 = vpop.permute.xlu1 %1638  ;;  %2418 = vrcp.f32 %v1619_v48 }
0x10e8   :  { %620 = vst.msk [vmem:[#allocation3] sm:$0xff] %vm619_vm3, %v614_v49  ;;  %v1643_v14 = vadd.f32 %v1639_v61, %v1631_v3 }
0x10ea   :  { %2420 = vtanh.f32 %v1643_v14 }
0x10eb   :  { %v762_v11 = vpop.permute.xlu0 %761  ;;  %v616_v20 = vpop.permute.xlu1 %615 }
0x10ec   :  { %767 = vst.msk [vmem:[#allocation3 + $0x10] sm:$0xff] %vm619_vm3, %v762_v11  ;;  %621 = vst.msk [vmem:[#allocation3 + $0x8] sm:$0xff] %vm619_vm3, %v616_v20 }
0x10ef   :  { %v909_v26 = vpop.permute.xlu0 %908  ;;  %v764_v29 = vpop.permute.xlu1 %763  ;;  %v1658_v7 = vld [vmem:[#allocation3] sm:$0xff] }
0x10f0   :  { %v2417_v51 = vpop.eup %2416  ;;  %914 = vst.msk [vmem:[#allocation3 + $0x20] sm:$0xff] %vm619_vm3, %v909_v26  ;;  %768 = vst.msk [vmem:[#allocation3 + $0x18] sm:$0xff] %vm619_vm3, %v764_v29  ;;  %2015 = vmatprep.mubr.msk.f32.mxu1 %vm619_vm3, %v1658_v7 }
0x10f1   :  { %v1646_v55 = vmul.f32 %v2417_v51, %v2415_v23  ;;  %v2419_v44 = vpop.eup %2418 }
0x10f3   :  { %v1056_v17 = vpop.permute.xlu0 %1055  ;;  %1650 = vrot.lane.b32.xlu0 %v1646_v55, %s2425_s26  ;;  %v911_v59 = vpop.permute.xlu1 %910  ;;  %v1659_v19 = vld [vmem:[#allocation3 + $0x8] sm:$0xff]  ;;  %v1660_v63 = vld [vmem:[#allocation3 + $0x10] sm:$0xff] }
0x10f4   :  { %v2421_v13 = vpop.eup %2420  ;;  %1061 = vst.msk [vmem:[#allocation3 + $0x30] sm:$0xff] %vm619_vm3, %v1056_v17  ;;  %915 = vst.msk [vmem:[#allocation3 + $0x28] sm:$0xff] %vm619_vm3, %v911_v59  ;;  %2016 = vmatmul.mubr.msk.f32.vlgmr.msra.gmra.mrb[20].mxu1 %vm619_vm3, %v1659_v19 }
0x10f5   :  { %2018 = vmatprep.mubr.msk.f32.mxu1 %vm619_vm3, %v1660_v63  ;;  %v1647_v32 = vmul.f32 %v2421_v13, %v2419_v44 }
0x10f7   :  { %v1203_v28 = vpop.permute.xlu0 %1202  ;;  %v1058_v33 = vpop.permute.xlu1 %1057  ;;  %1652 = vrot.lane.b32.xlu1 %v1647_v32, %s2425_s26  ;;  %v1661_v22 = vld [vmem:[#allocation3 + $0x18] sm:$0xff]  ;;  %v1662_v18 = vld [vmem:[#allocation3 + $0x20] sm:$0xff] }
0x10f8   :  { %1208 = vst.msk [vmem:[#allocation3 + $0x40] sm:$0xff] %vm619_vm3, %v1203_v28  ;;  %1062 = vst.msk [vmem:[#allocation3 + $0x38] sm:$0xff] %vm619_vm3, %v1058_v33  ;;  %2019 = vmatmul.mubr.msk.f32.gmra.mrb[22].mxu1 %vm619_vm3, %v1661_v22 }
0x10f9   :  { %2021 = vmatprep.mubr.msk.f32.mxu1 %vm619_vm3, %v1662_v18 }
0x10fb   :  { %v1350_v35 = vpop.permute.xlu0 %1349  ;;  %v1205_v25 = vpop.permute.xlu1 %1204  ;;  %v1663_v37 = vld [vmem:[#allocation3 + $0x28] sm:$0xff]  ;;  %v1664_v50 = vld [vmem:[#allocation3 + $0x30] sm:$0xff] }
0x10fc   :  { %1355 = vst.msk [vmem:[#allocation3 + $0x50] sm:$0xff] %vm619_vm3, %v1350_v35  ;;  %1209 = vst.msk [vmem:[#allocation3 + $0x48] sm:$0xff] %vm619_vm3, %v1205_v25  ;;  %2022 = vmatmul.mubr.msk.f32.gmra.mrb[24].mxu1 %vm619_vm3, %v1663_v37 }
0x10fd   :  { %2024 = vmatprep.mubr.msk.f32.mxu1 %vm619_vm3, %v1664_v50 }
0x10ff   :  { %v1497_v52 = vpop.permute.xlu0 %1496  ;;  %v1352_v36 = vpop.permute.xlu1 %1351  ;;  %v1665_v53 = vld [vmem:[#allocation3 + $0x38] sm:$0xff]  ;;  %v1666_v24 = vld [vmem:[#allocation3 + $0x40] sm:$0xff] }
0x1100   :  { %1502 = vst.msk [vmem:[#allocation3 + $0x60] sm:$0xff] %vm619_vm3, %v1497_v52  ;;  %1356 = vst.msk [vmem:[#allocation3 + $0x58] sm:$0xff] %vm619_vm3, %v1352_v36  ;;  %2025 = vmatmul.mubr.msk.f32.gmra.mrb[26].mxu1 %vm619_vm3, %v1665_v53 }
0x1101   :  { %2027 = vmatprep.mubr.msk.f32.mxu1 %vm619_vm3, %v1666_v24 }
0x1103   :  { %v1499_v57 = vpop.permute.xlu1 %1498  ;;  %v1667_v34 = vld [vmem:[#allocation3 + $0x48] sm:$0xff]  ;;  %v1668_v54 = vld [vmem:[#allocation3 + $0x50] sm:$0xff] }
0x1104   :  { %1503 = vst.msk [vmem:[#allocation3 + $0x68] sm:$0xff] %vm619_vm3, %v1499_v57  ;;  %2028 = vmatmul.mubr.msk.f32.gmra.mrb[28].mxu1 %vm619_vm3, %v1667_v34 }
0x1105   :  { %2030 = vmatprep.mubr.msk.f32.mxu1 %vm619_vm3, %v1668_v54 }
0x1107   :  { %v1669_v62 = vld [vmem:[#allocation3 + $0x58] sm:$0xff]  ;;  %v1670_v2 = vld [vmem:[#allocation3 + $0x60] sm:$0xff] }
0x1108   :  { %2031 = vmatmul.mubr.msk.f32.gmra.mrb[30].mxu1 %vm619_vm3, %v1669_v62 }
0x1109   :  { %2033 = vmatprep.mubr.msk.f32.mxu1 %vm619_vm3, %v1670_v2 }
0x110b   :  { %v1671_v6 = vld [vmem:[#allocation3 + $0x68] sm:$0xff] }
0x110c   :  { %2034 = vmatmul.mubr.msk.f32.gmra.mrb[32].mxu1 %vm619_vm3, %v1671_v6 }
0x1165   :  { %v1651_v30 = vpop.permute.xlu0 %1650 }
0x1166   :  { %1656 = vst.msk [vmem:[#allocation3 + $0x70] sm:$0xff] %vm619_vm3, %v1651_v30 }
0x1169   :  { %v1653_v46 = vpop.permute.xlu1 %1652 }
0x116a   :  { %1657 = vst.msk [vmem:[#allocation3 + $0x78] sm:$0xff] %vm619_vm3, %v1653_v46 }
0x116d   :  { %v1672_v39 = vld [vmem:[#allocation3 + $0x70] sm:$0xff] }
0x116e   :  { %2036 = vmatprep.mubr.msk.f32.mxu1 %vm619_vm3, %v1672_v39 }
0x1171   :  { %v1673_v40 = vld [vmem:[#allocation3 + $0x78] sm:$0xff] }
0x1172   :  { %2037 = vmatmul.mubr.msk.f32.gmra.mrb[34].mxu1 %vm619_vm3, %v1673_v40 }
0x11c7   :  { %v2017_v12 = vpop.f32.mrb[20].mxu1 }
0x11c8   :  { %v1805_v43 = vadd.f32 %v2017_v12, %v1970_v45  ;;  %v1799_v41 = vpop.f32.mrb[21].mxu1 }
0x11c9   :  { %v1800_v10 = vadd.f32 %v1970_v45, %v1799_v41 }
0x11ca   :  { %1879 = vst [vmem:[%s3132_s8 + $0x8] sm:$0xff] %v1805_v43 }
0x11cb   :  { %1878 = vst [vmem:[%s3132_s8] sm:$0xff] %v1800_v10  ;;  %v2020_v5 = vpop.f32.mrb[22].mxu1 }
0x11cc   :  { %v1815_v15 = vadd.f32 %v2020_v5, %v1970_v45  ;;  %v1809_v8 = vpop.f32.mrb[23].mxu1 }
0x11cd   :  { %v1810_v42 = vadd.f32 %v1970_v45, %v1809_v8 }
0x11ce   :  { %1881 = vst [vmem:[%s3132_s8 + $0x18] sm:$0xff] %v1815_v15 }
0x11cf   :  { %1880 = vst [vmem:[%s3132_s8 + $0x10] sm:$0xff] %v1810_v42  ;;  %v2023_v16 = vpop.f32.mrb[24].mxu1 }
0x11d0   :  { %v1825_v4 = vadd.f32 %v2023_v16, %v1970_v45  ;;  %v1819_v9 = vpop.f32.mrb[25].mxu1 }
0x11d1   :  { %v1820_v31 = vadd.f32 %v1970_v45, %v1819_v9 }
0x11d2   :  { %1883 = vst [vmem:[%s3132_s8 + $0x28] sm:$0xff] %v1825_v4 }
0x11d3   :  { %1882 = vst [vmem:[%s3132_s8 + $0x20] sm:$0xff] %v1820_v31  ;;  %v2026_v21 = vpop.f32.mrb[26].mxu1 }
0x11d4   :  { %v1835_v27 = vadd.f32 %v2026_v21, %v1970_v45  ;;  %v1829_v47 = vpop.f32.mrb[27].mxu1 }
0x11d5   :  { %v1830_v56 = vadd.f32 %v1970_v45, %v1829_v47 }
0x11d6   :  { %1885 = vst [vmem:[%s3132_s8 + $0x38] sm:$0xff] %v1835_v27 }
0x11d7   :  { %1884 = vst [vmem:[%s3132_s8 + $0x30] sm:$0xff] %v1830_v56  ;;  %v2029_v58 = vpop.f32.mrb[28].mxu1 }
0x11d8   :  { %v1845_v1 = vadd.f32 %v2029_v58, %v1970_v45  ;;  %v1839_v60 = vpop.f32.mrb[29].mxu1 }
0x11d9   :  { %v1840_v38 = vadd.f32 %v1970_v45, %v1839_v60 }
0x11da   :  { %1887 = vst [vmem:[%s3132_s8 + $0x48] sm:$0xff] %v1845_v1 }
0x11db   :  { %1886 = vst [vmem:[%s3132_s8 + $0x40] sm:$0xff] %v1840_v38  ;;  %v2032_v0 = vpop.f32.mrb[30].mxu1 }
0x11dc   :  { %v1855_v48 = vadd.f32 %v2032_v0, %v1970_v45  ;;  %v1849_v3 = vpop.f32.mrb[31].mxu1 }
0x11dd   :  { %v1850_v49 = vadd.f32 %v1970_v45, %v1849_v3 }
0x11de   :  { %1889 = vst [vmem:[%s3132_s8 + $0x58] sm:$0xff] %v1855_v48 }
0x11df   :  { %1888 = vst [vmem:[%s3132_s8 + $0x50] sm:$0xff] %v1850_v49  ;;  %v2035_v61 = vpop.f32.mrb[32].mxu1 }
0x11e0   :  { %v1865_v14 = vadd.f32 %v2035_v61, %v1970_v45  ;;  %v1859_v11 = vpop.f32.mrb[33].mxu1 }
0x11e1   :  { %v1860_v20 = vadd.f32 %v1970_v45, %v1859_v11 }
0x11e2   :  { %1891 = vst [vmem:[%s3132_s8 + $0x68] sm:$0xff] %v1865_v14 }
0x11e3   :  { %1890 = vst [vmem:[%s3132_s8 + $0x60] sm:$0xff] %v1860_v20 }
0x1245   :  { %v2038_v23 = vpop.f32.mrb[34].mxu1 }
0x1246   :  { %v1875_v26 = vadd.f32 %v2038_v23, %v1970_v45  ;;  %v1869_v29 = vpop.f32.mrb[35].mxu1 }
0x1247   :  { %v1870_v7 = vadd.f32 %v1970_v45, %v1869_v29 }
0x1248   :  { %1893 = vst [vmem:[%s3132_s8 + $0x78] sm:$0xff] %v1875_v26 }
0x1249   :  { %1892 = vst [vmem:[%s3132_s8 + $0x70] sm:$0xff] %v1870_v7 }

</bundles_post_ra>
